<compile_context>
chip_gen: v5e
topology: v5e:2x2
jax: 0.10.0
libtpu: 0.0.40
codegen_flags: <defaults>
</compile_context>

<pallas_src>
import jax
import jax.numpy as jnp
from jax.experimental import pallas as pl
from jax.experimental.pallas import tpu as pltpu


def _fusion_kernel(mri_ref, pet_ref, cli_ref, glob_ref):
    mri = mri_ref[...]            # (TB, Fm)
    pet = pet_ref[...]            # (TB, Fm)
    cli = cli_ref[...]            # (TB, Fc)

    tb, fm = mri.shape

    # shuffle_interleave(mri, pet): vis[:, 2i] = mri[:, i], vis[:, 2i+1] = pet[:, i].
    # Pure lane interleave — stack on a new minor axis and collapse it.  No MXU,
    # no O(Fm^2) masks; the XLU/relayout slot is free under the DMA roofline.
    vis = jnp.stack([mri, pet], axis=-1).reshape(tb, 2 * fm)

    # concat((vision_feature, cli), dim=1) emitted as ONE lane-dense full-tile store.
    glob_ref[...] = jnp.concatenate(
        [vis.astype(glob_ref.dtype), cli.astype(glob_ref.dtype)], axis=1)


def _round_up(x, m):
    return (x + m - 1) // m * m


def _pick_batch_tile(B, Fg, itemsize, *, vmem_budget=16 << 20, max_tile=2048):
    """Sublane-aligned batch tile sized for VMEM and for >=~4 grid steps."""
    if B <= 8:
        return B
    # Double-buffered working set per row: inputs (Fm+Fm+Fc = Fg) + output (Fg).
    bytes_per_row = 2 * 2 * Fg * itemsize
    tb_vmem = max(8, (vmem_budget // max(bytes_per_row, 1)) // 8 * 8)
    # Aim for at least ~4 grid steps so megacore sharding / double buffering engage.
    tb_split = max(8, _round_up(pl.cdiv(B, 4), 8))
    return int(min(tb_vmem, tb_split, max_tile, _round_up(B, 8)))


def triple_model_concat(mri, pet, cli):
    assert mri.ndim == 2 and pet.shape == mri.shape and cli.ndim == 2
    assert cli.shape[0] == mri.shape[0]
    B, Fm = mri.shape
    Fc = cli.shape[1]
    dtype = mri.dtype
    Fg = 2 * Fm + Fc
    itemsize = jnp.dtype(dtype).itemsize

    tb = _pick_batch_tile(B, Fg, itemsize)
    grid = (pl.cdiv(B, tb),)

    # Data-movement-only kernel: flops=0 is the honest estimate.
    bytes_accessed = int((2 * B * Fm + B * Fc + B * Fg) * itemsize)
    cost = pl.CostEstimate(flops=0, transcendentals=0,
                           bytes_accessed=bytes_accessed)

    # Double-buffered in+out working set; keep a comfortable scoped-VMEM request
    # that stays well inside v7x's 64 MiB physical VMEM.
    vmem_need = 2 * 2 * Fg * tb * itemsize
    vmem_limit = int(min(max(2 * vmem_need, 32 << 20), 48 << 20))

    glob = pl.pallas_call(
        _fusion_kernel,
        out_shape=jax.ShapeDtypeStruct((B, Fg), dtype),
        grid=grid,
        in_specs=[
            pl.BlockSpec((tb, Fm), lambda i: (i, 0)),
            pl.BlockSpec((tb, Fm), lambda i: (i, 0)),
            pl.BlockSpec((tb, Fc), lambda i: (i, 0)),
        ],
        out_specs=pl.BlockSpec((tb, Fg), lambda i: (i, 0)),
        compiler_params=pltpu.CompilerParams(
            dimension_semantics=("parallel",),
            vmem_limit_bytes=vmem_limit),
        cost_estimate=cost,
    )(mri, pet, cli)

    # The module returns its inputs unchanged: hand them back directly
    # (no kernel pass-through outputs, no extra HBM copies).
    return mri, pet, cli, glob


if __name__ == "__main__":
    B, Fm, Fc = 16, 64, 32
    key = jax.random.PRNGKey(0)
    k1, k2, k3 = jax.random.split(key, 3)
    mri = jax.random.normal(k1, (B, Fm), dtype=jnp.float32)
    pet = jax.random.normal(k2, (B, Fm), dtype=jnp.float32)
    cli = jax.random.normal(k3, (B, Fc), dtype=jnp.float32)

    outs = triple_model_concat(mri, pet, cli)
    jax.block_until_ready(outs)
    mri_o, pet_o, cli_o, glob = outs

    # Pure-JAX reference.
    ref_vis = jnp.stack([mri, pet], axis=-1).reshape(B, 2 * Fm)
    ref_glob = jnp.concatenate([ref_vis, cli], axis=1)

    assert glob.shape == (B, 2 * Fm + Fc)
    assert jnp.array_equal(mri_o, mri)
    assert jnp.array_equal(pet_o, pet)
    assert jnp.array_equal(cli_o, cli)
    assert jnp.allclose(glob, ref_glob, atol=1e-6)

    print("KERNEL_OK")
</pallas_src>

<mosaic_0001>
module attributes {stable_mosaic.version = 11 : i64} {
  func.func @_fusion_kernel(%arg0: i32, %arg1: memref<8x64xf32, #tpu.memory_space<vmem>>, %arg2: memref<8x64xf32, #tpu.memory_space<vmem>>, %arg3: memref<8x32xf32, #tpu.memory_space<vmem>>, %arg4: memref<8x160xf32, #tpu.memory_space<vmem>>) attributes {dimension_semantics = [#tpu.dimension_semantics<parallel>], iteration_bounds = array<i64: 2>, scalar_prefetch = 0 : i64, scratch_operands = 0 : i64, tpu.core_type = #tpu.core_type<tc>, window_params = [{transform_indices = @transform_0, window_bounds = array<i64: 8, 64>}, {transform_indices = @transform_1, window_bounds = array<i64: 8, 64>}, {transform_indices = @transform_2, window_bounds = array<i64: 8, 32>}, {transform_indices = @transform_3, window_bounds = array<i64: 8, 160>}]} {
    %c0 = arith.constant 0 : index
    %c0_0 = arith.constant 0 : index
    %0 = vector.load %arg1[%c0, %c0_0] : memref<8x64xf32, #tpu.memory_space<vmem>>, vector<8x64xf32>
    %c0_1 = arith.constant 0 : index
    %c0_2 = arith.constant 0 : index
    %1 = vector.load %arg2[%c0_1, %c0_2] : memref<8x64xf32, #tpu.memory_space<vmem>>, vector<8x64xf32>
    %c0_3 = arith.constant 0 : index
    %c0_4 = arith.constant 0 : index
    %2 = vector.load %arg3[%c0_3, %c0_4] : memref<8x32xf32, #tpu.memory_space<vmem>>, vector<8x32xf32>
    %3 = vector.shape_cast %0 : vector<8x64xf32> to vector<8x64x1xf32>
    %4 = vector.shape_cast %1 : vector<8x64xf32> to vector<8x64x1xf32>
    %5 = tpu.concatenate %3, %4 in 2 : vector<8x64x1xf32>, vector<8x64x1xf32> -> vector<8x64x2xf32>
    %6 = vector.shape_cast %5 : vector<8x64x2xf32> to vector<8x128xf32>
    %7 = tpu.concatenate %6, %2 in 1 : vector<8x128xf32>, vector<8x32xf32> -> vector<8x160xf32>
    %c0_5 = arith.constant 0 : index
    %c0_6 = arith.constant 0 : index
    %8 = vector.load %arg4[%c0_5, %c0_6] : memref<8x160xf32, #tpu.memory_space<vmem>>, vector<8x160xf32>
    tpu.vector_store %arg4[%c0_5, %c0_6], %7 {strides = array<i32>} : memref<8x160xf32, #tpu.memory_space<vmem>>, vector<8x160xf32>,
    return
  }
  func.func @transform_0(%arg0: i32) -> (i32, i32) {
    %c0_i32 = arith.constant 0 : i32
    %c0_i32_0 = arith.constant 0 : i32
    return %arg0, %c0_i32 : i32, i32
  }
  func.func @transform_1(%arg0: i32) -> (i32, i32) {
    %c0_i32 = arith.constant 0 : i32
    %c0_i32_0 = arith.constant 0 : i32
    return %arg0, %c0_i32 : i32, i32
  }
  func.func @transform_2(%arg0: i32) -> (i32, i32) {
    %c0_i32 = arith.constant 0 : i32
    %c0_i32_0 = arith.constant 0 : i32
    return %arg0, %c0_i32 : i32, i32
  }
  func.func @transform_3(%arg0: i32) -> (i32, i32) {
    %c0_i32 = arith.constant 0 : i32
    %c0_i32_0 = arith.constant 0 : i32
    return %arg0, %c0_i32 : i32, i32
  }
}

</mosaic_0001>

<bundles_post_ra>
// kernel: tpu_custom_call.1
= control target key start
LH: loop header
LB: loop body
LE: loop exit
PB: predicated region body
PF: predicated region fallthrough
CT: control target
= control target key end

     0   :  { %s4595_s0 = inlined_call_operand.hbm [shape: f32[16,64], index: 0, kind: input, shape index: {}]   ;;  %s4596_s1 = inlined_call_operand.hbm [shape: f32[16,64], index: 1, kind: input, shape index: {}]   ;;  %s4597_s2 = inlined_call_operand.hbm [shape: f32[16,32], index: 2, kind: input, shape index: {}]   ;;  %s4598_s3 = inlined_call_operand.hbm [shape: f32[16,160], index: 3, kind: output, shape index: {}]  }
   0x1   :  { %4604 = sst [smem:[#allocation55_spill]] %s4596_s1 }
   0x2   :  { %8 = vsyncpa [#allocation3], 0 }
   0x3   :  { %10 = vsyncpa [#allocation3 + $0x1], 0 }
   0x4   :  { %11 = vsyncpa [#allocation6], 0 }
   0x5   :  { %13 = vsyncpa [#allocation6 + $0x1], 0 }
   0x6   :  { %14 = vsyncpa [#allocation4], 0 }
   0x7   :  { %16 = vsyncpa [#allocation4 + $0x1], 0  ;;  %s3021_s12 = smov 0   ;;  %s3023_s13 = smov 0  }
   0x8   :  { %s3025_s14 = smov 0   ;;  %s3027_s15 = smov 0  }
   0x9 LB: > { %s3042_s16 = sadd.s32 4294967295, %s2934_s15   ;;  %s2522_s17 = sadd.s32 4294967294, %s2934_s15   ;;  %s2934_s15 = sphi %s3027_s15, %s4729_s15   ;;  %s2930_s14 = sphi %s3025_s14, %s4728_s14   ;;  %s2926_s13 = sphi %s3023_s13, %s4727_s13   ;;  %s2922_s12 = sphi %s3021_s12, %s4726_s12  }
   0xa   : > { %s3046_s18 = sadd.s32 1, %s2934_s15   ;;  %s29_s19 = sadd.s32 1, %s2930_s14 }
   0xb   : > { %s26_s20 = ssub.s32 %s2934_s15, %s3046_s18  ;;  %p36_p0 = scmp.ne.s32.totalorder %s2930_s14, %s2926_s13 }
   0xc   : > { %p27_p1 = scmp.eq.s32.totalorder %s26_s20, 0  ;;  %p37_p2 = scmp.eq.s32.totalorder %s2934_s15, 0 }
   0xd   : > { %p42_p3 = scmp.ne.s32.totalorder %s2926_s13, %s2922_s12  ;;  %p43_p4 = scmp.eq.s32.totalorder %s3042_s16, 0 }
   0xe   : > { %s3058_s21 = scalar_select %p27_p1, %s2930_s14, %s29_s19  }
   0xf   : > { %p38_p5 = por %p37_p2, %p36_p0  ;;  %p3060_p6 = por %p43_p4, %p42_p3 }
  0x10   : > { %4605 = sst [smem:[#allocation12_spill]] %s3058_s21  ;;  %p118_p7 = scmp.eq.s32.totalorder %s3042_s16, 1 }
  0x11   : > { %p124_p8 = scmp.eq.s32.totalorder %s2522_s17, 1  ;;  %p2524_p9 = scmp.ge.s32.totalorder %s2934_s15, 2 }
  0x12   : > { %p2564_p10 = scmp.lt.s32.totalorder %s2934_s15, 2  ;;  %p3067_p11 = por %p118_p7, %p36_p0 }
  0x13   : > { %p3071_p12 = por %p124_p8, %p42_p3  ;;  %s144_s25 = sand.u32 1, %s2930_s14  }
  0x14   : > { %s3077_s26 = sshll.u32 %s2934_s15, 3  ;;  %s3081_s27 = sshll.u32 %s144_s25, 3 }
  0x15   : > { %p3083_p13 = pnand %p2564_p10, %p38_p5  ;;  %s163_s29 = sand.u32 1, %s2934_s15  }
  0x16   : > { %s4610_s1 = sld [smem:[#allocation55_spill]]  ;;  %s167_s6 = scalar_lea.vmem [#allocation5], %s3081_s27 }
  0x17   : > { %s175_s7 = sshll.u32 %s167_s6, 4  ;;  %p2531_p0 = scmp.ge.s32.totalorder %s2934_s15, 1  ;;  %s176_s7 = int_to_ptr.vmem [resolvable:$true] %s175_s7 }
  0x18   : > { %s3094_s9 = scalar_lea.sflag [#allocation6], %s163_s29  ;;  %p2778_p2 = pneg %p3083_p13 }
  0x1c   : > { %s171_s5 = scalar_lea.hbm %s4610_s1, %s3077_s26  ;;  %s2781_s20 = scalar_lea.hbm %s4610_s1, 16 }
  0x1d   : > { %s173_s8 = sshll.u32 %s171_s5, 4  ;;  %s174_s8 = int_to_ptr.hbm [resolvable:$true] %s173_s8 }
  0x1e   : > { %s2774_s10 = sshra.s32 %s174_s8, 4  ;;  %s2775_s10 = int_to_ptr.hbm [resolvable:$true] %s2774_s10 }
  0x1f   : > { %s2776_s11 = scalar_lea.hbm %s2775_s10, 8  ;;  %p2782_p5 = scmp.lt.s32.totalorder %s2775_s10, %s4610_s1 }
  0x20   : > { %p2777_p1 = scmp.ne.s32.totalorder %s2775_s10, %s2776_s11  ;;  %p2783_p7 = scmp.lt.s32.totalorder %s2781_s20, %s2776_s11 }
  0x22   : > { %p2779_p3 = pnand %p2778_p2, %p2777_p1  ;;  %p2784_p8 = por %p2783_p7, %p2782_p5 }
  0x24   : > { %p2780_p4 = pneg %p2779_p3 }
  0x26   : > { %p2785_p10 = pnand %p2784_p8, %p2780_p4 }
  0x28   : > { %2788 = shalt.err (!%p2785_p10)
}
  0x29   : > { %2556 = dma.hbm_to_vmem [thread:$0]  (!%p3083_p13), %s174_s8, 128, %s176_s7, %s3094_s9  }
  0x2a   : > { %p199_p1 = scmp.lt.s32.totalorder %s2934_s15, 3  ;;  %s152_s6 = scalar_lea.hbm %s4595_s0, %s3077_s26 }
  0x2b   : > { %s154_s11 = sshll.u32 %s152_s6, 4  ;;  %s148_s17 = scalar_lea.vmem [#allocation2], %s3081_s27  ;;  %s155_s11 = int_to_ptr.hbm [resolvable:$true] %s154_s11 }
  0x2c   : > { %p3117_p3 = pnand %p2531_p0, %p199_p1  ;;  %s156_s19 = sshll.u32 %s148_s17, 4  ;;  %s157_s19 = int_to_ptr.vmem [resolvable:$true] %s156_s19 }
  0x2d   : > { %s145_s20 = scalar_lea.sflag [#allocation3], %s144_s25  ;;  %s2804_s30 = sshra.s32 %s155_s11, 4  ;;  %s2805_s30 = int_to_ptr.hbm [resolvable:$true] %s2804_s30 }
  0x2e   : > { %s2806_s7 = scalar_lea.hbm %s2805_s30, 8  ;;  %s2811_s29 = scalar_lea.hbm %s4595_s0, 16 }
  0x2f   : > { %p2807_p4 = scmp.ne.s32.totalorder %s2805_s30, %s2806_s7  ;;  %p2812_p0 = scmp.lt.s32.totalorder %s2805_s30, %s4595_s0 }
  0x30   : > { %p2813_p8 = scmp.lt.s32.totalorder %s2811_s29, %s2806_s7 }
  0x31   : > { %p2809_p5 = pnand %p2807_p4, %p2778_p2 }
  0x32   : > { %p2814_p10 = por %p2813_p8, %p2812_p0 }
  0x33   : > { %p2810_p7 = pneg %p2809_p5 }
  0x35   : > { %p2815_p1 = pnand %p2814_p10, %p2810_p7 }
  0x37   : > { %2818 = shalt.err (!%p2815_p1)
}
  0x38   : > { %2553 = dma.hbm_to_vmem [thread:$0]  (!%p3083_p13), %s155_s11, 128, %s157_s19, %s145_s20  }
  0x39   : > { %s190_s1 = scalar_lea.hbm %s4597_s2, %s3077_s26  ;;  %s186_s8 = scalar_lea.vmem [#allocation7], %s3081_s27 }
  0x3a   : > { %s194_s4 = sshll.u32 %s186_s8, 4  ;;  %s192_s21 = sshll.u32 %s190_s1, 4  ;;  %s195_s4 = int_to_ptr.vmem [resolvable:$true] %s194_s4  ;;  %s193_s21 = int_to_ptr.hbm [resolvable:$true] %s192_s21 }
  0x3b   : > { %s2834_s30 = sshra.s32 %s193_s21, 4  ;;  %s2841_s11 = scalar_lea.hbm %s4597_s2, 16  ;;  %s2835_s30 = int_to_ptr.hbm [resolvable:$true] %s2834_s30 }
  0x3c   : > { %s2836_s7 = scalar_lea.hbm %s2835_s30, 8  ;;  %p2842_p0 = scmp.lt.s32.totalorder %s2835_s30, %s4597_s2 }
  0x3d   : > { %p2837_p4 = scmp.ne.s32.totalorder %s2835_s30, %s2836_s7  ;;  %p2843_p8 = scmp.lt.s32.totalorder %s2841_s11, %s2836_s7 }
  0x3f   : > { %p2839_p5 = pnand %p2837_p4, %p2778_p2  ;;  %p2844_p10 = por %p2843_p8, %p2842_p0 }
  0x41   : > { %p2840_p7 = pneg %p2839_p5 }
  0x43   : > { %p2845_p1 = pnand %p2844_p10, %p2840_p7 }
  0x45   : > { %2848 = shalt.err (!%p2845_p1)
}
  0x46   : > { %2559 = dma.hbm_to_vmem [thread:$0]  (!%p3083_p13), %s193_s21, 128, %s195_s4, %s3094_s9  }
  0x47   : > { %203 = sbr.rel (%p3117_p3) target bundleno = 1259 (0x4eb), region = 32 }
  0x4c   : > { %s3155_s1 = sand.u32 1, %s2926_s13  }
  0x4d   : > { %s3158_s26 = sshll.u32 %s3155_s1, 3  ;;  %s206_s27 = scalar_lea.sflag [#allocation3], %s3155_s1 }
  0x4e   : > { %s209_s6 = scalar_lea.vmem [#allocation2], %s3158_s26 }
  0x4f   : > { %2909 = dma.done.wait (%p3060_p6), %s206_s27, 128  }
  0x50   : > { %2911 = vsyncadd (%p3060_p6), %s206_s27, 4294967168  ;;  %s215_s21 = sand.u32 1, %s3042_s16   ;;  %s219_s9 = scalar_lea.vmem [#allocation5], %s3158_s26 }
  0x51   : > { %s216_s28 = scalar_lea.sflag [#allocation6], %s215_s21 }
  0x52   : > { %2913 = dma.done.wait (%p3060_p6), %s216_s28, 256  }
  0x53   : > { %2915 = vsyncadd (%p3060_p6), %s216_s28, 4294967040  ;;  %v267_v0 = vlaneseq  ;;  %v3183_v4 = vld [vmem:[%s209_s6] sm:$0xff]  ;;  %v3204_v10 = vld [vmem:[%s219_s9] sm:$0xff]  ;;  %vm1050_vm0 = vcmask 7168   ;;  %vm1116_vm1 = vcmask 1047556   ;;  %s2938_s22 = smov 6  }
  0x54   : > { %v3186_v5 = vperm.slane %v3183_v4, 0  ;;  %v315_v6 = vperm.slane %v3183_v4, 1  ;;  %v3201_v9 = vperm.slane %v3183_v4, 6  ;;  %v3209_v11 = vperm.slane %v3204_v10, 3  ;;  %s2939_s10 = smov 4   ;;  %s2940_s25 = smov 2  }
  0x55   : > { %v3172_v1 = vshrl.u32 %v267_v0, 7  ;;  %v364_v15 = vperm.slane %v3183_v4, 2  ;;  %v3237_v16 = vperm.slane %v3183_v4, 7  ;;  %v3241_v17 = vperm.slane %v3204_v10, 4  ;;  %s2941_s17 = smov 12   ;;  %s2942_s8 = smov 10  }
  0x56   : > { %v413_v18 = vperm.slane %v3183_v4, 3  ;;  %v3258_v19 = vperm.slane %v3204_v10, 0  ;;  %v3262_v20 = vperm.slane %v3204_v10, 5  ;;  %v462_v21 = vperm.slane %v3183_v4, 4  ;;  %s2943_s4 = smov 8   ;;  %s2944_s30 = smov 14  }
  0x57   : > { %2663 = vset.pattern.permute.xlu0 %v3172_v1  ;;  %v3176_v2 = vadd.s32 32, %v3172_v1  ;;  %v3179_v3 = vadd.s32 16, %v3172_v1  ;;  %v3193_v7 = vadd.s32 40, %v3172_v1  ;;  %v3196_v8 = vadd.s32 24, %v3172_v1  ;;  %s2945_s7 = smov 20   ;;  %s2946_s29 = smov 18  }
  0x58   : > { %v3212_v12 = vadd.s32 56, %v3172_v1  ;;  %v3215_v13 = vadd.s32 48, %v3172_v1  ;;  %v3224_v14 = vadd.s32 8, %v3172_v1  ;;  %v3273_v22 = vperm.slane %v3204_v10, 1  ;;  %s2947_s5 = smov 16   ;;  %s2948_s11 = smov 26  }
  0x59   : > { %2666 = vset.pattern.permute.xlu2 %v3176_v2  ;;  %2664 = vset.pattern.permute.xlu1 %v3179_v3  ;;  %v3279_v23 = vperm.slane %v3204_v10, 6  ;;  %v511_v24 = vperm.slane %v3183_v4, 5  ;;  %v3294_v25 = vperm.slane %v3204_v10, 2  ;;  %v3316_v27 = vperm.slane %v3204_v10, 7  ;;  %s2949_s19 = smov 24   ;;  %s2950_s20 = smov 22  }
  0x5a   : > { %s2951_s27 = smov 32   ;;  %s2952_s6 = smov 30   ;;  %vm2264_vm2 = vcmask 15360   ;;  %vm2266_vm3 = vcmask 31744   ;;  %vm2268_vm4 = vcmask 48128   ;;  %vm2270_vm5 = vcmask 64512  }
  0x5b   : > { %4612 = vst [vmem:[#allocation13_spill] sm:$0xff] %v3279_v23  ;;  %s2953_s21 = smov 28   ;;  %s2954_s28 = smov 38   ;;  %vm2272_vm6 = vcmask 80896   ;;  %vm2274_vm7 = vcmask 97280   ;;  %vm2276_vm8 = vcmask 113664  }
  0x5c   : > { %4613 = vst [vmem:[#allocation14_spill] sm:$0xff] %v3316_v27  ;;  %s2955_s9 = smov 36   ;;  %vm2278_vm9 = vcmask 130048   ;;  %vm2280_vm10 = vcmask 146432   ;;  %vm2282_vm11 = vcmask 162816   ;;  %vm2284_vm12 = vcmask 179200  }
  0x5d   : > { %vm2286_vm13 = vcmask 195584   ;;  %vm2288_vm14 = vcmask 211968   ;;  %vm2290_vm15 = vcmask 228352  }
  0x5f   : > { %271 = vperm.xlu0 %2663, %v3186_v5  }
  0x61   : > { %295 = vperm.xlu2 %2666, %v3186_v5   ;;  %283 = vperm.xlu1 %2664, %v3186_v5  }
  0x67   : > { %320 = vperm.xlu0 %2663, %v315_v6  }
  0x69   : > { %2667 = vset.pattern.permute.xlu2 %v3193_v7  ;;  %2665 = vset.pattern.permute.xlu1 %v3196_v8 }
  0x6f   : > { %565 = vperm.xlu0 %2663, %v3201_v9  }
  0x71   : > { %301 = vperm.xlu2 %2667, %v3186_v5   ;;  %289 = vperm.xlu1 %2665, %v3186_v5  }
  0x77   : > { %810 = vperm.xlu0 %2663, %v3209_v11  }
  0x79   : > { %2669 = vset.pattern.permute.xlu2 %v3212_v12  ;;  %2668 = vset.pattern.permute.xlu1 %v3215_v13 }
  0x7f   : > { %2734 = vset.pattern.permute.xlu0 %v3193_v7 }
  0x81   : > { %313 = vperm.xlu2 %2669, %v3186_v5   ;;  %307 = vperm.xlu1 %2668, %v3186_v5  }
  0x87   : > { %350 = vperm.xlu0 %2734, %v315_v6  }
  0x89   : > { %2671 = vset.pattern.permute.xlu2 %v3179_v3  ;;  %2670 = vset.pattern.permute.xlu1 %v3224_v14 }
  0x8f   : > { %595 = vperm.xlu0 %2734, %v3201_v9  }
  0x91   : > { %332 = vperm.xlu2 %2671, %v315_v6   ;;  %326 = vperm.xlu1 %2670, %v315_v6  }
  0x97   : > { %840 = vperm.xlu0 %2734, %v3209_v11  }
  0x99   : > { %2673 = vset.pattern.permute.xlu2 %v3176_v2  ;;  %2672 = vset.pattern.permute.xlu1 %v3196_v8 }
  0x9f   : > { %2739 = vset.pattern.permute.xlu0 %v3179_v3 }
  0xa1   : > { %344 = vperm.xlu2 %2673, %v315_v6   ;;  %338 = vperm.xlu1 %2672, %v315_v6  }
  0xa7   : > { %381 = vperm.xlu0 %2739, %v364_v15  }
  0xa9   : > { %2675 = vset.pattern.permute.xlu2 %v3212_v12  ;;  %2674 = vset.pattern.permute.xlu1 %v3215_v13 }
  0xaf   : > { %626 = vperm.xlu0 %2739, %v3237_v16  }
  0xb1   : > { %362 = vperm.xlu2 %2675, %v315_v6   ;;  %356 = vperm.xlu1 %2674, %v315_v6  }
  0xb7   : > { %871 = vperm.xlu0 %2739, %v3241_v17  }
  0xb9   : > { %2677 = vset.pattern.permute.xlu2 %v3224_v14  ;;  %2676 = vset.pattern.permute.xlu1 %v3172_v1 }
  0xbb   : > { %v3313_v26 = vpop.permute.xlu2 %295 }
  0xbf   : > { %2744 = vset.pattern.permute.xlu0 %v3212_v12 }
  0xc1   : > { %375 = vperm.xlu2 %2677, %v364_v15   ;;  %369 = vperm.xlu1 %2676, %v364_v15  }
  0xc7   : > { %411 = vperm.xlu0 %2744, %v364_v15  }
  0xc9   : > { %2679 = vset.pattern.permute.xlu2 %v3176_v2  ;;  %2678 = vset.pattern.permute.xlu1 %v3196_v8 }
  0xcb   : > { %v3321_v28 = vpop.permute.xlu2 %301 }
  0xcf   : > { %656 = vperm.xlu0 %2744, %v3237_v16  }
  0xd1   : > { %393 = vperm.xlu2 %2679, %v364_v15   ;;  %387 = vperm.xlu1 %2678, %v364_v15   ;;  %v3396_v52 = vpop.permute.xlu0 %271 }
  0xd3   : > { %v3338_v32 = vpop.permute.xlu1 %283 }
  0xd7   : > { %901 = vperm.xlu0 %2744, %v3241_v17  }
  0xd9   : > { %2681 = vset.pattern.permute.xlu2 %v3215_v13  ;;  %2680 = vset.pattern.permute.xlu1 %v3193_v7  ;;  %v3404_v55 = vpop.permute.xlu0 %320 }
  0xdb   : > { %v3326_v29 = vpop.permute.xlu2 %313 }
  0xdf   : > { %2749 = vset.pattern.permute.xlu0 %v3176_v2 }
  0xe1   : > { %405 = vperm.xlu2 %2681, %v364_v15   ;;  %399 = vperm.xlu1 %2680, %v364_v15   ;;  %v3414_v58 = vpop.permute.xlu0 %565 }
  0xe2   : > { %4620 = vst [vmem:[#allocation21_spill] sm:$0xff] %v3414_v58 }
  0xe3   : > { %v3344_v34 = vpop.permute.xlu1 %289 }
  0xe7   : > { %442 = vperm.xlu0 %2749, %v413_v18  }
  0xe9   : > { %2683 = vset.pattern.permute.xlu2 %v3224_v14  ;;  %2682 = vset.pattern.permute.xlu1 %v3172_v1  ;;  %v3424_v62 = vpop.permute.xlu0 %810 }
  0xeb   : > { %v3330_v30 = vpop.permute.xlu2 %332 }
  0xef   : > { %687 = vperm.xlu0 %2749, %v3258_v19  }
  0xf1   : > { %424 = vperm.xlu2 %2683, %v413_v18   ;;  %418 = vperm.xlu1 %2682, %v413_v18  }
  0xf3   : > { %v3350_v36 = vpop.permute.xlu1 %307 }
  0xf7   : > { %932 = vperm.xlu0 %2749, %v3262_v20  }
  0xf9   : > { %2685 = vset.pattern.permute.xlu2 %v3196_v8  ;;  %2684 = vset.pattern.permute.xlu1 %v3179_v3 }
  0xfb   : > { %v3334_v31 = vpop.permute.xlu2 %344 }
  0xff   : > { %2754 = vset.pattern.permute.xlu0 %v3224_v14 }
 0x101   : > { %436 = vperm.xlu2 %2685, %v413_v18   ;;  %430 = vperm.xlu1 %2684, %v413_v18  }
 0x103   : > { %v3356_v38 = vpop.permute.xlu1 %326 }
 0x107   : > { %277 = vperm.xlu0 %2754, %v3186_v5   ;;  %v3434_v5 = vpop.permute.xlu0 %350 }
 0x109   : > { %2687 = vset.pattern.permute.xlu2 %v3215_v13  ;;  %2686 = vset.pattern.permute.xlu1 %v3193_v7 }
 0x10b   : > { %v3340_v33 = vpop.permute.xlu2 %362 }
 0x10f   : > { %473 = vperm.xlu0 %2754, %v462_v21   ;;  %v3442_v10 = vpop.permute.xlu0 %595 }
 0x110   : > { %4628 = vst [vmem:[#allocation29_spill] sm:$0xff] %v3442_v10 }
 0x111   : > { %454 = vperm.xlu2 %2687, %v413_v18   ;;  %448 = vperm.xlu1 %2686, %v413_v18  }
 0x113   : > { %v3362_v40 = vpop.permute.xlu1 %338 }
 0x117   : > { %718 = vperm.xlu0 %2754, %v3273_v22  }
 0x119   : > { %2689 = vset.pattern.permute.xlu2 %v3172_v1  ;;  %2688 = vset.pattern.permute.xlu1 %v3212_v12 }
 0x11b   : > { %v3346_v35 = vpop.permute.xlu2 %375 }
 0x11f   : > { %963 = vperm.xlu0 %2754, %v3279_v23  }
 0x121   : > { %467 = vperm.xlu2 %2689, %v462_v21   ;;  %460 = vperm.xlu1 %2688, %v413_v18   ;;  %v3452_v18 = vpop.permute.xlu0 %840 }
 0x123   : > { %v3368_v42 = vpop.permute.xlu1 %356 }
 0x127   : > { %2759 = vset.pattern.permute.xlu0 %v3215_v13 }
 0x129   : > { %2691 = vset.pattern.permute.xlu2 %v3196_v8  ;;  %2690 = vset.pattern.permute.xlu1 %v3179_v3 }
 0x12b   : > { %v3352_v37 = vpop.permute.xlu2 %393 }
 0x12f   : > { %503 = vperm.xlu0 %2759, %v462_v21  }
 0x131   : > { %485 = vperm.xlu2 %2691, %v462_v21   ;;  %479 = vperm.xlu1 %2690, %v462_v21  }
 0x133   : > { %v3374_v44 = vpop.permute.xlu1 %369 }
 0x137   : > { %748 = vperm.xlu0 %2759, %v3273_v22  }
 0x139   : > { %2693 = vset.pattern.permute.xlu2 %v3193_v7  ;;  %2692 = vset.pattern.permute.xlu1 %v3176_v2 }
 0x13b   : > { %v3358_v39 = vpop.permute.xlu2 %405 }
 0x13f   : > { %993 = vperm.xlu0 %2759, %v3279_v23  }
 0x141   : > { %497 = vperm.xlu2 %2693, %v462_v21   ;;  %491 = vperm.xlu1 %2692, %v462_v21  }
 0x143   : > { %v3380_v46 = vpop.permute.xlu1 %387 }
 0x147   : > { %2764 = vset.pattern.permute.xlu0 %v3196_v8 }
 0x149   : > { %2695 = vset.pattern.permute.xlu2 %v3172_v1  ;;  %2694 = vset.pattern.permute.xlu1 %v3212_v12 }
 0x14b   : > { %v3364_v41 = vpop.permute.xlu2 %424 }
 0x14f   : > { %534 = vperm.xlu0 %2764, %v511_v24  }
 0x151   : > { %516 = vperm.xlu2 %2695, %v511_v24   ;;  %509 = vperm.xlu1 %2694, %v462_v21  }
 0x153   : > { %v3386_v48 = vpop.permute.xlu1 %399 }
 0x157   : > { %779 = vperm.xlu0 %2764, %v3294_v25  }
 0x159   : > { %2697 = vset.pattern.permute.xlu2 %v3179_v3  ;;  %2696 = vset.pattern.permute.xlu1 %v3224_v14 }
 0x15b   : > { %v3370_v43 = vpop.permute.xlu2 %436 }
 0x15f   : > { %1024 = vperm.xlu0 %2764, %v3316_v27  }
 0x161   : > { %528 = vperm.xlu2 %2697, %v511_v24   ;;  %522 = vperm.xlu1 %2696, %v511_v24  }
 0x163   : > { %v3392_v50 = vpop.permute.xlu1 %418 }
 0x167   : > { %2773 = vset.pattern.permute.xlu0 %v3212_v12 }
 0x169   : > { %2699 = vset.pattern.permute.xlu2 %v3193_v7  ;;  %2698 = vset.pattern.permute.xlu1 %v3176_v2 }
 0x16b   : > { %v3376_v45 = vpop.permute.xlu2 %454 }
 0x16c   : > { %4614 = vst [vmem:[#allocation15_spill] sm:$0xff] %v3376_v45 }
 0x171   : > { %546 = vperm.xlu2 %2699, %v511_v24   ;;  %540 = vperm.xlu1 %2698, %v511_v24  }
 0x173   : > { %v3400_v53 = vpop.permute.xlu1 %430 }
 0x179   : > { %2701 = vset.pattern.permute.xlu2 %v3212_v12  ;;  %2700 = vset.pattern.permute.xlu1 %v3215_v13 }
 0x17b   : > { %v3382_v47 = vpop.permute.xlu2 %467 }
 0x17c   : > { %4615 = vst [vmem:[#allocation16_spill] sm:$0xff] %v3382_v47  ;;  %v2936_v47 = vmov 1983009808  }
 0x17d   : > { %v1121_v58 = vunpack.c.l.s4 %v2936_v47 }
 0x181   : > { %558 = vperm.xlu2 %2701, %v511_v24   ;;  %552 = vperm.xlu1 %2700, %v511_v24  }
 0x183   : > { %v3408_v56 = vpop.permute.xlu1 %448 }
 0x189   : > { %2703 = vset.pattern.permute.xlu2 %v3179_v3  ;;  %2702 = vset.pattern.permute.xlu1 %v3224_v14 }
 0x18b   : > { %v3388_v49 = vpop.permute.xlu2 %485 }
 0x18c   : > { %4616 = vst [vmem:[#allocation17_spill] sm:$0xff] %v3388_v49 }
 0x191   : > { %577 = vperm.xlu2 %2703, %v3201_v9   ;;  %571 = vperm.xlu1 %2702, %v3201_v9  }
 0x193   : > { %v3416_v59 = vpop.permute.xlu1 %460 }
 0x199   : > { %2705 = vset.pattern.permute.xlu2 %v3176_v2  ;;  %2704 = vset.pattern.permute.xlu1 %v3196_v8 }
 0x19b   : > { %v3394_v51 = vpop.permute.xlu2 %497 }
 0x19c   : > { %4617 = vst [vmem:[#allocation18_spill] sm:$0xff] %v3394_v51 }
 0x1a1   : > { %589 = vperm.xlu2 %2705, %v3201_v9   ;;  %583 = vperm.xlu1 %2704, %v3201_v9  }
 0x1a3   : > { %v3422_v61 = vpop.permute.xlu1 %479 }
 0x1a4   : > { %4622 = vst [vmem:[#allocation23_spill] sm:$0xff] %v3422_v61 }
 0x1a9   : > { %2707 = vset.pattern.permute.xlu2 %v3212_v12  ;;  %2706 = vset.pattern.permute.xlu1 %v3215_v13 }
 0x1ab   : > { %v3402_v54 = vpop.permute.xlu2 %516 }
 0x1ac   : > { %4618 = vst [vmem:[#allocation19_spill] sm:$0xff] %v3402_v54  ;;  %v1075_v54 = vsel %vm1050_vm0, %v3392_v50, %v3424_v62 }
 0x1ad   : > { %v1128_v10 = vrot.slane %v1075_v54, 4 }
 0x1b1   : > { %607 = vperm.xlu2 %2707, %v3201_v9   ;;  %601 = vperm.xlu1 %2706, %v3201_v9  }
 0x1b3   : > { %v3430_v0 = vpop.permute.xlu1 %491 }
 0x1b4   : > { %4624 = vst [vmem:[#allocation25_spill] sm:$0xff] %v3430_v0 }
 0x1b9   : > { %2709 = vset.pattern.permute.xlu2 %v3224_v14  ;;  %2708 = vset.pattern.permute.xlu1 %v3172_v1 }
 0x1bb   : > { %v3410_v57 = vpop.permute.xlu2 %528 }
 0x1bc   : > { %4619 = vst [vmem:[#allocation20_spill] sm:$0xff] %v3410_v57 }
 0x1c1   : > { %620 = vperm.xlu2 %2709, %v3237_v16   ;;  %614 = vperm.xlu1 %2708, %v3237_v16  }
 0x1c3   : > { %v3438_v6 = vpop.permute.xlu1 %509 }
 0x1c4   : > { %4626 = vst [vmem:[#allocation27_spill] sm:$0xff] %v3438_v6 }
 0x1c9   : > { %2711 = vset.pattern.permute.xlu2 %v3176_v2  ;;  %2710 = vset.pattern.permute.xlu1 %v3196_v8 }
 0x1cb   : > { %v3418_v60 = vpop.permute.xlu2 %546 }
 0x1cc   : > { %4621 = vst [vmem:[#allocation22_spill] sm:$0xff] %v3418_v60 }
 0x1d1   : > { %638 = vperm.xlu2 %2711, %v3237_v16   ;;  %632 = vperm.xlu1 %2710, %v3237_v16  }
 0x1d3   : > { %v3446_v15 = vpop.permute.xlu1 %522 }
 0x1d4   : > { %4629 = vst [vmem:[#allocation30_spill] sm:$0xff] %v3446_v15 }
 0x1d9   : > { %2713 = vset.pattern.permute.xlu2 %v3215_v13  ;;  %2712 = vset.pattern.permute.xlu1 %v3193_v7 }
 0x1db   : > { %v3426_v63 = vpop.permute.xlu2 %558 }
 0x1dc   : > { %4623 = vst [vmem:[#allocation24_spill] sm:$0xff] %v3426_v63 }
 0x1e1   : > { %650 = vperm.xlu2 %2713, %v3237_v16   ;;  %644 = vperm.xlu1 %2712, %v3237_v16  }
 0x1e9   : > { %2715 = vset.pattern.permute.xlu2 %v3224_v14  ;;  %2714 = vset.pattern.permute.xlu1 %v3172_v1 }
 0x1eb   : > { %v3432_v4 = vpop.permute.xlu2 %577 }
 0x1ec   : > { %4625 = vst [vmem:[#allocation26_spill] sm:$0xff] %v3432_v4 }
 0x1f1   : > { %669 = vperm.xlu2 %2715, %v3258_v19   ;;  %663 = vperm.xlu1 %2714, %v3258_v19  }
 0x1f9   : > { %2717 = vset.pattern.permute.xlu2 %v3196_v8  ;;  %2716 = vset.pattern.permute.xlu1 %v3179_v3 }
 0x1fb   : > { %v3440_v9 = vpop.permute.xlu2 %589 }
 0x1fc   : > { %4627 = vst [vmem:[#allocation28_spill] sm:$0xff] %v3440_v9 }
 0x201   : > { %681 = vperm.xlu2 %2717, %v3258_v19   ;;  %675 = vperm.xlu1 %2716, %v3258_v19  }
 0x209   : > { %2719 = vset.pattern.permute.xlu2 %v3215_v13  ;;  %2718 = vset.pattern.permute.xlu1 %v3193_v7 }
 0x20b   : > { %v3448_v16 = vpop.permute.xlu2 %607 }
 0x20c   : > { %4630 = vst [vmem:[#allocation31_spill] sm:$0xff] %v3448_v16 }
 0x211   : > { %699 = vperm.xlu2 %2719, %v3258_v19   ;;  %693 = vperm.xlu1 %2718, %v3258_v19  }
 0x219   : > { %2721 = vset.pattern.permute.xlu2 %v3172_v1  ;;  %2720 = vset.pattern.permute.xlu1 %v3212_v12 }
 0x21b   : > { %v3456_v21 = vpop.permute.xlu2 %620 }
 0x21c   : > { %4632 = vst [vmem:[#allocation33_spill] sm:$0xff] %v3456_v21 }
 0x221   : > { %712 = vperm.xlu2 %2721, %v3273_v22   ;;  %705 = vperm.xlu1 %2720, %v3258_v19   ;;  %v3454_v19 = vpop.permute.xlu1 %540 }
 0x222   : > { %4631 = vst [vmem:[#allocation32_spill] sm:$0xff] %v3454_v19 }
 0x229   : > { %2723 = vset.pattern.permute.xlu2 %v3196_v8  ;;  %2722 = vset.pattern.permute.xlu1 %v3179_v3  ;;  %v3460_v24 = vpop.permute.xlu1 %552 }
 0x22a   : > { %4633 = vst [vmem:[#allocation34_spill] sm:$0xff] %v3460_v24 }
 0x22b   : > { %v3464_v63 = vpop.permute.xlu2 %638 }
 0x22c   : > { %4634 = vst [vmem:[#allocation35_spill] sm:$0xff] %v3464_v63 }
 0x231   : > { %730 = vperm.xlu2 %2723, %v3273_v22   ;;  %724 = vperm.xlu1 %2722, %v3273_v22   ;;  %v3468_v15 = vpop.permute.xlu1 %571 }
 0x232   : > { %4635 = vst [vmem:[#allocation36_spill] sm:$0xff] %v3468_v15 }
 0x239   : > { %2725 = vset.pattern.permute.xlu2 %v3193_v7  ;;  %2724 = vset.pattern.permute.xlu1 %v3176_v2  ;;  %v3476_v21 = vpop.permute.xlu1 %583 }
 0x23a   : > { %4638 = vst [vmem:[#allocation39_spill] sm:$0xff] %v3476_v21  ;;  %v3522_v21 = vunpack.c.0.s8 %v1121_v58 }
 0x23b   : > { %v3472_v60 = vpop.permute.xlu2 %650 }
 0x23c   : > { %4637 = vst [vmem:[#allocation38_spill] sm:$0xff] %v3472_v60 }
 0x241   : > { %742 = vperm.xlu2 %2725, %v3273_v22   ;;  %736 = vperm.xlu1 %2724, %v3273_v22   ;;  %v3484_v63 = vpop.permute.xlu1 %601 }
 0x242   : > { %4640 = vst [vmem:[#allocation41_spill] sm:$0xff] %v3484_v63 }
 0x249   : > { %2727 = vset.pattern.permute.xlu2 %v3172_v1  ;;  %2726 = vset.pattern.permute.xlu1 %v3212_v12 }
 0x24b   : > { %v3480_v57 = vpop.permute.xlu2 %669 }
 0x251   : > { %761 = vperm.xlu2 %2727, %v3294_v25   ;;  %754 = vperm.xlu1 %2726, %v3273_v22   ;;  %v3462_v22 = vpop.permute.xlu0 %381 }
 0x259   : > { %2729 = vset.pattern.permute.xlu2 %v3179_v3  ;;  %2728 = vset.pattern.permute.xlu1 %v3224_v14  ;;  %v3470_v16 = vpop.permute.xlu0 %626 }
 0x25a   : > { %4636 = vst [vmem:[#allocation37_spill] sm:$0xff] %v3470_v16  ;;  %v3490_v16 = vpop.permute.xlu1 %614 }
 0x25b   : > { %4641 = vst [vmem:[#allocation42_spill] sm:$0xff] %v3490_v16  ;;  %v3492_v9 = vpop.permute.xlu2 %681 }
 0x261   : > { %773 = vperm.xlu2 %2729, %v3294_v25   ;;  %767 = vperm.xlu1 %2728, %v3294_v25   ;;  %v3478_v24 = vpop.permute.xlu0 %871 }
 0x262   : > { %4639 = vst [vmem:[#allocation40_spill] sm:$0xff] %v3478_v24  ;;  %v3496_v4 = vpop.permute.xlu1 %632 }
 0x263   : > { %4642 = vst [vmem:[#allocation43_spill] sm:$0xff] %v3496_v4 }
 0x269   : > { %2731 = vset.pattern.permute.xlu2 %v3193_v7  ;;  %2730 = vset.pattern.permute.xlu1 %v3176_v2  ;;  %v3488_v60 = vpop.permute.xlu0 %411 }
 0x26b   : > { %v3498_v0 = vpop.permute.xlu2 %699 }
 0x271   : > { %791 = vperm.xlu2 %2731, %v3294_v25   ;;  %785 = vperm.xlu1 %2730, %v3294_v25   ;;  %v3500_v15 = vpop.permute.xlu0 %656 }
 0x272   : > { %4643 = vst [vmem:[#allocation44_spill] sm:$0xff] %v3500_v15 }
 0x279   : > { %2733 = vset.pattern.permute.xlu2 %v3212_v12  ;;  %2732 = vset.pattern.permute.xlu1 %v3215_v13  ;;  %v3506_v16 = vpop.permute.xlu0 %901 }
 0x27a   : > { %4645 = vst [vmem:[#allocation46_spill] sm:$0xff] %v3506_v16 }
 0x27b   : > { %v713_v63 = vpop.permute.xlu2 %712 }
 0x27c   : > { %v1059_v15 = vsel %vm1050_vm0, %v3404_v55, %v713_v63 }
 0x27d   : > { %v1130_v24 = vrot.slane %v1059_v15, 4  ;;  %v1129_v63 = vsel %vm1116_vm1, %v1128_v10, %v1059_v15 }
 0x27f   : > { %v1131_v51 = vsel %vm1116_vm1, %v1075_v54, %v1130_v24  ;;  %v1135_v54 = vperm.slane %v1129_v63, %v3522_v21 }
 0x280   : > { %v1139_v50 = vperm.slane %v1131_v51, %v3522_v21 }
 0x281   : > { %803 = vperm.xlu2 %2733, %v3294_v25   ;;  %797 = vperm.xlu1 %2732, %v3294_v25   ;;  %v3504_v25 = vpop.permute.xlu1 %644  ;;  %v3512_v61 = vpop.permute.xlu0 %442  ;;  %v1164_v27 = vrot.slane %v1135_v54, 4 }
 0x282   : > { %4644 = vst [vmem:[#allocation45_spill] sm:$0xff] %v3504_v25  ;;  %v1176_v10 = vrot.slane %v1139_v50, 4 }
 0x289   : > { %2736 = vset.pattern.permute.xlu2 %v3179_v3  ;;  %2735 = vset.pattern.permute.xlu1 %v3224_v14  ;;  %v664_v19 = vpop.permute.xlu1 %663  ;;  %v3529_v49 = vpop.permute.xlu0 %687 }
 0x28a   : > { %v1051_v55 = vsel %vm1050_vm0, %v3396_v52, %v664_v19 }
 0x28b   : > { %v3510_v6 = vpop.permute.xlu2 %730  ;;  %v1118_v47 = vrot.slane %v1051_v55, 4 }
 0x291   : > { %822 = vperm.xlu2 %2736, %v3209_v11   ;;  %816 = vperm.xlu1 %2735, %v3209_v11   ;;  %v676_v25 = vpop.permute.xlu1 %675 }
 0x299   : > { %2738 = vset.pattern.permute.xlu2 %v3176_v2  ;;  %2737 = vset.pattern.permute.xlu1 %v3196_v8  ;;  %v694_v62 = vpop.permute.xlu1 %693 }
 0x29b   : > { %v743_v16 = vpop.permute.xlu2 %742 }
 0x2a1   : > { %834 = vperm.xlu2 %2738, %v3209_v11   ;;  %828 = vperm.xlu1 %2737, %v3209_v11  }
 0x2a9   : > { %2741 = vset.pattern.permute.xlu2 %v3212_v12  ;;  %2740 = vset.pattern.permute.xlu1 %v3215_v13 }
 0x2ab   : > { %v762_v4 = vpop.permute.xlu2 %761 }
 0x2ac   : > { %v1067_v58 = vsel %vm1050_vm0, %v3374_v44, %v762_v4 }
 0x2ad   : > { %v1115_v24 = vrot.slane %v1067_v58, 4  ;;  %v1119_v52 = vsel %vm1116_vm1, %v1067_v58, %v1118_v47  ;;  %v3550_v47 = vpop.permute.xlu0 %932 }
 0x2ae   : > { %v1127_v15 = vperm.slane %v1119_v52, %v3522_v21 }
 0x2af   : > { %v1117_v19 = vsel %vm1116_vm1, %v1115_v24, %v1051_v55  ;;  %v706_v55 = vpop.permute.xlu1 %705  ;;  %v1053_v24 = vsel %vm1050_vm0, %v3338_v32, %v676_v25  ;;  %v1064_v32 = vsel %vm1050_vm0, %v3434_v5, %v743_v16 }
 0x2b0   : > { %v1123_v45 = vperm.slane %v1117_v19, %v3522_v21  ;;  %v3540_v51 = vsel %vm1116_vm1, %v1176_v10, %v1127_v15  ;;  %v1178_v23 = vrot.slane %v1127_v15, 4  ;;  %v1690_v25 = vrot.slane %v1064_v32, 4 }
 0x2b1   : > { %4646 = vst [vmem:[#allocation47_spill] sm:$0xff] %v3540_v51  ;;  %852 = vperm.xlu2 %2741, %v3209_v11   ;;  %846 = vperm.xlu1 %2740, %v3209_v11   ;;  %v1342_v11 = vrot.slane %v1053_v24, 4 }
 0x2b2   : > { %v1166_v44 = vrot.slane %v1123_v45, 4  ;;  %v3545_v4 = vsel %vm1116_vm1, %v1164_v27, %v1123_v45  ;;  %v3548_v63 = vsel %vm1116_vm1, %v1139_v50, %v1178_v23 }
 0x2b3   : > { %4647 = vst [vmem:[#allocation48_spill] sm:$0xff] %v3548_v63 }
 0x2b4   : > { %v3553_v58 = vsel %vm1116_vm1, %v1135_v54, %v1166_v44 }
 0x2b5   : > { %v278_v45 = vpop.permute.xlu0 %277 }
 0x2b7   : > { %v3559_v52 = vpop.permute.xlu1 %724 }
 0x2b9   : > { %2743 = vset.pattern.permute.xlu2 %v3224_v14  ;;  %2742 = vset.pattern.permute.xlu1 %v3172_v1 }
 0x2bb   : > { %v774_v27 = vpop.permute.xlu2 %773 }
 0x2bc   : > { %v1069_v23 = vsel %vm1050_vm0, %v3462_v22, %v774_v27  ;;  %v1080_v22 = vsel %vm1050_vm0, %v3408_v56, %v3452_v18 }
 0x2bd   : > { %v1340_v50 = vrot.slane %v1069_v23, 4  ;;  %v3564_v10 = vsel %vm1116_vm1, %v1069_v23, %v1342_v11  ;;  %v3578_v19 = vpop.permute.xlu0 %473  ;;  %v1688_v44 = vrot.slane %v1080_v22, 4  ;;  %v1056_v11 = vsel %vm1050_vm0, %v3321_v28, %v694_v62 }
 0x2be   : > { %4648 = vst [vmem:[#allocation49_spill] sm:$0xff] %v3578_v19  ;;  %v1678_v27 = vrot.slane %v1056_v11, 4 }
 0x2bf   : > { %v3567_v54 = vsel %vm1116_vm1, %v1340_v50, %v1053_v24  ;;  %v3573_v15 = vpop.permute.xlu1 %736  ;;  %v1691_v24 = vsel %vm1116_vm1, %v1080_v22, %v1690_v25  ;;  %v1689_v5 = vsel %vm1116_vm1, %v1688_v44, %v1064_v32  ;;  %v1052_v22 = vsel %vm1050_vm0, %v278_v45, %v3480_v57 }
 0x2c0   : > { %v1699_v16 = vperm.slane %v1691_v24, %v3522_v21  ;;  %v1695_v18 = vperm.slane %v1689_v5, %v3522_v21  ;;  %v1230_v45 = vrot.slane %v1052_v22, 4 }
 0x2c1   : > { %865 = vperm.xlu2 %2743, %v3241_v17   ;;  %859 = vperm.xlu1 %2742, %v3241_v17  }
 0x2c2   : > { %v1736_v62 = vrot.slane %v1699_v16, 4  ;;  %v1724_v24 = vrot.slane %v1695_v18, 4 }
 0x2c5   : > { %v3601_v51 = vpop.permute.xlu0 %718 }
 0x2c7   : > { %v3587_v23 = vpop.permute.xlu1 %754 }
 0x2c9   : > { %2746 = vset.pattern.permute.xlu2 %v3176_v2  ;;  %2745 = vset.pattern.permute.xlu1 %v3196_v8 }
 0x2cb   : > { %v792_v56 = vpop.permute.xlu2 %791 }
 0x2cc   : > { %v1072_v50 = vsel %vm1050_vm0, %v3386_v48, %v792_v56 }
 0x2cd   : > { %v1676_v25 = vrot.slane %v1072_v50, 4  ;;  %v1679_v28 = vsel %vm1116_vm1, %v1072_v50, %v1678_v27 }
 0x2ce   : > { %v1687_v32 = vperm.slane %v1679_v28, %v3522_v21 }
 0x2cf   : > { %v1677_v44 = vsel %vm1116_vm1, %v1676_v25, %v1056_v11 }
 0x2d0   : > { %v1683_v19 = vperm.slane %v1677_v44, %v3522_v21  ;;  %v3599_v63 = vsel %vm1116_vm1, %v1736_v62, %v1687_v32  ;;  %v1738_v5 = vrot.slane %v1687_v32, 4 }
 0x2d1   : > { %883 = vperm.xlu2 %2746, %v3241_v17   ;;  %877 = vperm.xlu1 %2745, %v3241_v17  }
 0x2d2   : > { %v1726_v48 = vrot.slane %v1683_v19, 4  ;;  %v3606_v27 = vsel %vm1116_vm1, %v1724_v24, %v1683_v19  ;;  %v3609_v57 = vsel %vm1116_vm1, %v1699_v16, %v1738_v5  ;;  %v1058_v19 = vsel %vm1050_vm0, %v3326_v29, %v706_v55  ;;  %v3624_v16 = vpop.permute.xlu0 %963 }
 0x2d3   : > { %v768_v11 = vpop.permute.xlu1 %767  ;;  %v1055_v29 = vsel %vm1050_vm0, %v3313_v26, %v3529_v49  ;;  %v1061_v26 = vsel %vm1050_vm0, %v3330_v30, %v3559_v52 }
 0x2d4   : > { %v1068_v56 = vsel %vm1050_vm0, %v3346_v35, %v768_v11  ;;  %v3614_v50 = vsel %vm1116_vm1, %v1695_v18, %v1726_v48  ;;  %v1902_v35 = vrot.slane %v1058_v19, 4  ;;  %v1566_v55 = vrot.slane %v1055_v29, 4 }
 0x2d5   : > { %v1228_v25 = vrot.slane %v1068_v56, 4  ;;  %v3617_v28 = vsel %vm1116_vm1, %v1068_v56, %v1230_v45  ;;  %v1354_v49 = vrot.slane %v1061_v26, 4 }
 0x2d7   : > { %v3620_v62 = vsel %vm1116_vm1, %v1228_v25, %v1052_v22 }
 0x2d9   : > { %2748 = vset.pattern.permute.xlu2 %v3215_v13  ;;  %2747 = vset.pattern.permute.xlu1 %v3193_v7 }
 0x2da   : > { %v3641_v5 = vpop.permute.xlu0 %503 }
 0x2db   : > { %v804_v32 = vpop.permute.xlu2 %803 }
 0x2dc   : > { %v1074_v18 = vsel %vm1050_vm0, %v3488_v60, %v804_v32 }
 0x2dd   : > { %v1900_v44 = vrot.slane %v1074_v18, 4  ;;  %v3631_v24 = vsel %vm1116_vm1, %v1074_v18, %v1902_v35 }
 0x2df   : > { %v3634_v22 = vsel %vm1116_vm1, %v1900_v44, %v1058_v19 }
 0x2e1   : > { %895 = vperm.xlu2 %2748, %v3241_v17   ;;  %889 = vperm.xlu1 %2747, %v3241_v17   ;;  %v1351_v17 = vperm.slane %v3564_v10, %v3522_v21  ;;  %v1057_v10 = vsel %vm1050_vm0, %v3350_v36, %v3498_v0 }
 0x2e2   : > { %v3658_v35 = vpop.permute.xlu0 %748  ;;  %v1790_v36 = vrot.slane %v1057_v10, 4 }
 0x2e3   : > { %v786_v48 = vpop.permute.xlu1 %785  ;;  %v1402_v52 = vrot.slane %v1351_v17, 4 }
 0x2e4   : > { %v1071_v60 = vsel %vm1050_vm0, %v3352_v37, %v786_v48  ;;  %v1347_v37 = vperm.slane %v3567_v54, %v3522_v21 }
 0x2e5   : > { %v1564_v45 = vrot.slane %v1071_v60, 4  ;;  %v1567_v11 = vsel %vm1116_vm1, %v1071_v60, %v1566_v55 }
 0x2e7   : > { %v1565_v56 = vsel %vm1116_vm1, %v1564_v45, %v1055_v29  ;;  %v1390_v29 = vrot.slane %v1347_v37, 4 }
 0x2e9   : > { %2751 = vset.pattern.permute.xlu2 %v3224_v14  ;;  %2750 = vset.pattern.permute.xlu1 %v3172_v1 }
 0x2eb   : > { %v823_v25 = vpop.permute.xlu2 %822 }
 0x2ec   : > { %v1077_v19 = vsel %vm1050_vm0, %v3400_v53, %v823_v25  ;;  %v3683_v25 = vpop.permute.xlu0 %993 }
 0x2ed   : > { %v1352_v32 = vrot.slane %v1077_v19, 4  ;;  %v1355_v30 = vsel %vm1116_vm1, %v1077_v19, %v1354_v49 }
 0x2ee   : > { %v1363_v18 = vperm.slane %v1355_v30, %v3522_v21 }
 0x2ef   : > { %v1353_v44 = vsel %vm1116_vm1, %v1352_v32, %v1061_v26 }
 0x2f0   : > { %v1359_v54 = vperm.slane %v1353_v44, %v3522_v21  ;;  %v1400_v55 = vrot.slane %v1363_v18, 4  ;;  %v3668_v53 = vsel %vm1116_vm1, %v1363_v18, %v1402_v52  ;;  %v1571_v18 = vperm.slane %v1565_v56, %v3522_v21 }
 0x2f1   : > { %914 = vperm.xlu2 %2751, %v3262_v20   ;;  %908 = vperm.xlu1 %2750, %v3262_v20  }
 0x2f2   : > { %v1388_v48 = vrot.slane %v1359_v54, 4  ;;  %v3673_v60 = vsel %vm1116_vm1, %v1359_v54, %v1390_v29  ;;  %v3676_v45 = vsel %vm1116_vm1, %v1400_v55, %v1351_v17  ;;  %v1063_v17 = vsel %vm1050_vm0, %v3334_v31, %v3573_v15 }
 0x2f3   : > { %v798_v0 = vpop.permute.xlu1 %797  ;;  %v1060_v31 = vsel %vm1050_vm0, %v3356_v38, %v3601_v51 }
 0x2f4   : > { %v1073_v26 = vsel %vm1050_vm0, %v3358_v39, %v798_v0  ;;  %v3681_v49 = vsel %vm1116_vm1, %v1388_v48, %v1347_v37  ;;  %v1575_v39 = vperm.slane %v1567_v11, %v3522_v21  ;;  %v1578_v37 = vrot.slane %v1063_v17, 4  ;;  %v3705_v15 = vpop.permute.xlu0 %534 }
 0x2f5   : > { %v1788_v19 = vrot.slane %v1073_v26, 4  ;;  %v3686_v32 = vsel %vm1116_vm1, %v1073_v26, %v1790_v36  ;;  %v1614_v48 = vrot.slane %v1571_v18, 4  ;;  %v1239_v0 = vperm.slane %v3617_v28, %v3522_v21 }
 0x2f6   : > { %v1626_v54 = vrot.slane %v1575_v39, 4 }
 0x2f7   : > { %v3689_v30 = vsel %vm1116_vm1, %v1788_v19, %v1057_v10  ;;  %v1242_v19 = vrot.slane %v1060_v31, 4 }
 0x2f9   : > { %2753 = vset.pattern.permute.xlu2 %v3196_v8  ;;  %2752 = vset.pattern.permute.xlu1 %v3179_v3 }
 0x2fb   : > { %v835_v52 = vpop.permute.xlu2 %834 }
 0x2fc   : > { %v1079_v44 = vsel %vm1050_vm0, %v3512_v61, %v835_v52 }
 0x2fd   : > { %v1576_v29 = vrot.slane %v1079_v44, 4  ;;  %v1579_v10 = vsel %vm1116_vm1, %v1079_v44, %v1578_v37  ;;  %v1235_v37 = vperm.slane %v3620_v62, %v3522_v21  ;;  %v1066_v62 = vsel %vm1050_vm0, %v3340_v33, %v3587_v23 }
 0x2fe   : > { %v1587_v55 = vperm.slane %v1579_v10, %v3522_v21  ;;  %v1290_v10 = vrot.slane %v1239_v0, 4 }
 0x2ff   : > { %v1577_v11 = vsel %vm1116_vm1, %v1576_v29, %v1063_v17 }
 0x300   : > { %v1583_v56 = vperm.slane %v1577_v11, %v3522_v21  ;;  %v1624_v36 = vrot.slane %v1587_v55, 4  ;;  %v3710_v61 = vsel %vm1116_vm1, %v1587_v55, %v1626_v54 }
 0x301   : > { %926 = vperm.xlu2 %2753, %v3262_v20   ;;  %920 = vperm.xlu1 %2752, %v3262_v20  }
 0x302   : > { %v1612_v26 = vrot.slane %v1583_v56, 4  ;;  %v3717_v38 = vsel %vm1116_vm1, %v1583_v56, %v1614_v48  ;;  %v3720_v51 = vsel %vm1116_vm1, %v1624_v36, %v1575_v39  ;;  %v1054_v39 = vsel %vm1050_vm0, %v3344_v34, %v3492_v9  ;;  %v780_v56 = vpop.permute.xlu0 %779 }
 0x303   : > { %v817_v17 = vpop.permute.xlu1 %816  ;;  %v1911_v34 = vperm.slane %v3631_v24, %v3522_v21  ;;  %v1914_v36 = vrot.slane %v1066_v62, 4 }
 0x304   : > { %v1076_v52 = vsel %vm1050_vm0, %v3364_v41, %v817_v17  ;;  %v3727_v44 = vsel %vm1116_vm1, %v1612_v26, %v1571_v18  ;;  %v1278_v41 = vrot.slane %v1235_v37, 4  ;;  %v1907_v17 = vperm.slane %v3634_v22, %v3522_v21 }
 0x305   : > { %v1240_v29 = vrot.slane %v1076_v52, 4  ;;  %v1243_v28 = vsel %vm1116_vm1, %v1076_v52, %v1242_v19  ;;  %v1070_v19 = vsel %vm1050_vm0, %v3380_v46, %v780_v56  ;;  %v1062_v46 = vsel %vm1050_vm0, %v3362_v40, %v3510_v6 }
 0x306   : > { %v1251_v54 = vperm.slane %v1243_v28, %v3522_v21 }
 0x307   : > { %v1241_v55 = vsel %vm1116_vm1, %v1240_v29, %v1060_v31  ;;  %v1454_v31 = vrot.slane %v1054_v39, 4 }
 0x308   : > { %v1247_v18 = vperm.slane %v1241_v55, %v3522_v21  ;;  %v1288_v11 = vrot.slane %v1251_v54, 4  ;;  %v3740_v48 = vsel %vm1116_vm1, %v1251_v54, %v1290_v10  ;;  %v1452_v54 = vrot.slane %v1070_v19, 4 }
 0x309   : > { %2756 = vset.pattern.permute.xlu2 %v3215_v13  ;;  %2755 = vset.pattern.permute.xlu1 %v3193_v7  ;;  %v1455_v55 = vsel %vm1116_vm1, %v1070_v19, %v1454_v31 }
 0x30a   : > { %v1276_v9 = vrot.slane %v1247_v18, 4  ;;  %v3747_v33 = vsel %vm1116_vm1, %v1247_v18, %v1278_v41  ;;  %v3750_v23 = vsel %vm1116_vm1, %v1288_v11, %v1239_v0  ;;  %v1962_v0 = vrot.slane %v1911_v34, 4 }
 0x30b   : > { %v853_v26 = vpop.permute.xlu2 %852  ;;  %v1950_v41 = vrot.slane %v1907_v17, 4  ;;  %v1453_v11 = vsel %vm1116_vm1, %v1452_v54, %v1054_v39  ;;  %v1463_v56 = vperm.slane %v1455_v55, %v3522_v21 }
 0x30c   : > { %v1082_v52 = vsel %vm1050_vm0, %v3416_v59, %v853_v26  ;;  %v3759_v24 = vsel %vm1116_vm1, %v1276_v9, %v1235_v37 }
 0x30d   : > { %v1912_v29 = vrot.slane %v1082_v52, 4  ;;  %v1915_v28 = vsel %vm1116_vm1, %v1082_v52, %v1914_v36  ;;  %v1459_v36 = vperm.slane %v1453_v11, %v3522_v21 }
 0x30e   : > { %v1923_v10 = vperm.slane %v1915_v28, %v3522_v21 }
 0x30f   : > { %v1913_v22 = vsel %vm1116_vm1, %v1912_v29, %v1066_v62  ;;  %v1466_v62 = vrot.slane %v1062_v46, 4  ;;  %v1514_v29 = vrot.slane %v1463_v56, 4 }
 0x310   : > { %v1919_v59 = vperm.slane %v1913_v22, %v3522_v21  ;;  %v1960_v37 = vrot.slane %v1923_v10, 4  ;;  %v3770_v18 = vsel %vm1116_vm1, %v1923_v10, %v1962_v0 }
 0x311   : > { %944 = vperm.xlu2 %2756, %v3262_v20   ;;  %938 = vperm.xlu1 %2755, %v3262_v20  }
 0x312   : > { %v1948_v9 = vrot.slane %v1919_v59, 4  ;;  %v3777_v40 = vsel %vm1116_vm1, %v1919_v59, %v1950_v41  ;;  %v3780_v6 = vsel %vm1116_vm1, %v1960_v37, %v1911_v34  ;;  %v1502_v34 = vrot.slane %v1459_v36, 4  ;;  %v4649_v59 = vld [vmem:[#allocation13_spill] sm:$0xff] }
 0x313   : > { %v829_v31 = vpop.permute.xlu1 %828  ;;  %v1065_v41 = vsel %vm1050_vm0, %v3368_v42, %v3658_v35  ;;  %v1799_v37 = vperm.slane %v3686_v32, %v3522_v21 }
 0x314   : > { %v1078_v39 = vsel %vm1050_vm0, %v3370_v43, %v829_v31  ;;  %v3786_v26 = vsel %vm1116_vm1, %v1948_v9, %v1907_v17  ;;  %v1802_v11 = vrot.slane %v1065_v41, 4  ;;  %v1795_v9 = vperm.slane %v3689_v30, %v3522_v21 }
 0x315   : > { %v1464_v19 = vrot.slane %v1078_v39, 4  ;;  %v1467_v52 = vsel %vm1116_vm1, %v1078_v39, %v1466_v62  ;;  %v4650_v62 = vld [vmem:[#allocation15_spill] sm:$0xff] }
 0x316   : > { %v1475_v28 = vperm.slane %v1467_v52, %v3522_v21 }
 0x317   : > { %v1465_v0 = vsel %vm1116_vm1, %v1464_v19, %v1062_v46  ;;  %v1850_v19 = vrot.slane %v1799_v37, 4 }
 0x318   : > { %v1471_v10 = vperm.slane %v1465_v0, %v3522_v21  ;;  %v1512_v54 = vrot.slane %v1475_v28, 4  ;;  %v3793_v55 = vsel %vm1116_vm1, %v1475_v28, %v1514_v29 }
 0x319   : > { %2758 = vset.pattern.permute.xlu2 %v3172_v1  ;;  %2757 = vset.pattern.permute.xlu1 %v3212_v12 }
 0x31a   : > { %v1500_v43 = vrot.slane %v1471_v10, 4  ;;  %v3798_v17 = vsel %vm1116_vm1, %v1512_v54, %v1463_v56  ;;  %v3801_v22 = vsel %vm1116_vm1, %v1471_v10, %v1502_v34 }
 0x31c   : > { %v3804_v46 = vsel %vm1116_vm1, %v1500_v43, %v1459_v36  ;;  %v4655_v43 = vld [vmem:[#allocation14_spill] sm:$0xff] }
 0x321   : > { %957 = vperm.xlu2 %2758, %v4649_v59   ;;  %950 = vperm.xlu1 %2757, %v3262_v20   ;;  %v1838_v20 = vrot.slane %v1795_v9, 4 }
 0x323   : > { %v847_v56 = vpop.permute.xlu1 %846 }
 0x324   : > { %v1081_v31 = vsel %vm1050_vm0, %v4650_v62, %v847_v56 }
 0x325   : > { %v1800_v36 = vrot.slane %v1081_v31, 4  ;;  %v1803_v39 = vsel %vm1116_vm1, %v1081_v31, %v1802_v11  ;;  %v4656_v11 = vld [vmem:[#allocation43_spill] sm:$0xff] }
 0x326   : > { %v1811_v42 = vperm.slane %v1803_v39, %v3522_v21 }
 0x327   : > { %v1801_v35 = vsel %vm1116_vm1, %v1800_v36, %v1065_v41 }
 0x328   : > { %v1807_v52 = vperm.slane %v1801_v35, %v3522_v21  ;;  %v1848_v32 = vrot.slane %v1811_v42, 4  ;;  %v3822_v29 = vsel %vm1116_vm1, %v1811_v42, %v1850_v19  ;;  %v4657_v42 = vld [vmem:[#allocation17_spill] sm:$0xff] }
 0x329   : > { %4651 = vst [vmem:[#allocation13_spill] sm:$0xff] %v3822_v29  ;;  %2761 = vset.pattern.permute.xlu2 %v3196_v8  ;;  %2760 = vset.pattern.permute.xlu1 %v3179_v3  ;;  %v3839_v8 = vpop.permute.xlu2 %865 }
 0x32a   : > { %v1836_v30 = vrot.slane %v1807_v52, 4  ;;  %v3827_v28 = vsel %vm1116_vm1, %v1848_v32, %v1799_v37  ;;  %v3830_v0 = vsel %vm1116_vm1, %v1807_v52, %v1838_v20  ;;  %v1025_v37 = vpop.permute.xlu0 %1024 }
 0x32b   : > { %4652 = vst [vmem:[#allocation15_spill] sm:$0xff] %v3827_v28  ;;  %v1110_v56 = vsel %vm1050_vm0, %v4656_v11, %v1025_v37  ;;  %v4658_v37 = vld [vmem:[#allocation39_spill] sm:$0xff] }
 0x32c   : > { %4653 = vst [vmem:[#allocation50_spill] sm:$0xff] %v3830_v0  ;;  %v3833_v34 = vsel %vm1116_vm1, %v1836_v30, %v1795_v9  ;;  %v1488_v9 = vrot.slane %v1110_v56, 4 }
 0x32d   : > { %4654 = vst [vmem:[#allocation51_spill] sm:$0xff] %v3833_v34 }
 0x331   : > { %975 = vperm.xlu2 %2761, %v4649_v59   ;;  %969 = vperm.xlu1 %2760, %v4649_v59   ;;  %v3843_v10 = vpop.permute.xlu2 %883 }
 0x339   : > { %2763 = vset.pattern.permute.xlu2 %v3193_v7  ;;  %2762 = vset.pattern.permute.xlu1 %v3176_v2 }
 0x33b   : > { %v3847_v54 = vpop.permute.xlu2 %895 }
 0x341   : > { %987 = vperm.xlu2 %2763, %v4649_v59   ;;  %981 = vperm.xlu1 %2762, %v4649_v59  }
 0x349   : > { %2766 = vset.pattern.permute.xlu2 %v3172_v1  ;;  %2765 = vset.pattern.permute.xlu1 %v3212_v12 }
 0x34b   : > { %v3851_v41 = vpop.permute.xlu2 %914 }
 0x351   : > { %1006 = vperm.xlu2 %2766, %v4655_v43   ;;  %999 = vperm.xlu1 %2765, %v4649_v59  }
 0x359   : > { %2768 = vset.pattern.permute.xlu2 %v3179_v3  ;;  %2767 = vset.pattern.permute.xlu1 %v3224_v14  ;;  %v3867_v3 = vpop.permute.xlu1 %859 }
 0x35b   : > { %v927_v1 = vpop.permute.xlu2 %926 }
 0x35c   : > { %v1094_v62 = vsel %vm1050_vm0, %v3705_v15, %v927_v1 }
 0x35d   : > { %v1489_v31 = vsel %vm1116_vm1, %v1488_v9, %v1094_v62  ;;  %v1490_v36 = vrot.slane %v1094_v62, 4 }
 0x35e   : > { %v1495_v30 = vperm.slane %v1489_v31, %v3522_v21 }
 0x35f   : > { %v1491_v59 = vsel %vm1116_vm1, %v1110_v56, %v1490_v36 }
 0x360   : > { %v1499_v20 = vperm.slane %v1491_v59, %v3522_v21 }
 0x361   : > { %1018 = vperm.xlu2 %2768, %v4655_v43   ;;  %1012 = vperm.xlu1 %2767, %v4655_v43   ;;  %v878_v14 = vpop.permute.xlu1 %877 }
 0x362   : > { %v1086_v35 = vsel %vm1050_vm0, %v4657_v42, %v878_v14  ;;  %v1536_v1 = vrot.slane %v1499_v20, 4  ;;  %v1524_v14 = vrot.slane %v1495_v30, 4 }
 0x363   : > { %v1478_v52 = vrot.slane %v1086_v35, 4 }
 0x369   : > { %2770 = vset.pattern.permute.xlu2 %v3193_v7  ;;  %2769 = vset.pattern.permute.xlu1 %v3176_v2  ;;  %v890_v7 = vpop.permute.xlu1 %889  ;;  %v2937_v2 = vmov 1934713408  }
 0x36a   : > { %v1169_v19 = vunpack.c.l.s4 %v2937_v2 }
 0x36b   : > { %v3871_v15 = vpop.permute.xlu2 %944 }
 0x371   : > { %1036 = vperm.xlu2 %2770, %v4655_v43   ;;  %1030 = vperm.xlu1 %2769, %v4655_v43  }
 0x379   : > { %2772 = vset.pattern.permute.xlu2 %v3212_v12  ;;  %2771 = vset.pattern.permute.xlu1 %v3215_v13  ;;  %v909_v12 = vpop.permute.xlu1 %908  ;;  %v3878_v13 = vunpack.c.0.s8 %v1169_v19 }
 0x37b   : > { %v958_v39 = vpop.permute.xlu2 %957  ;;  %v1519_v9 = vperm.slane %v3798_v17, %v3878_v13  ;;  %v1507_v36 = vperm.slane %v3804_v46, %v3878_v13  ;;  %v1523_v31 = vperm.slane %v3793_v55, %v3878_v13  ;;  %v1511_v17 = vperm.slane %v3801_v22, %v3878_v13 }
 0x37d   : > { %v1562_v22 = vrot.slane %v1523_v31, 4 }
 0x381   : > { %1048 = vperm.xlu2 %2772, %v4655_v43   ;;  %1042 = vperm.xlu1 %2771, %v4655_v43  }
 0x38b   : > { %v976_v32 = vpop.permute.xlu2 %975 }
 0x38c   : > { %v1102_v11 = vsel %vm1050_vm0, %v4658_v37, %v976_v32  ;;  %v1558_v32 = vrot.slane %v1519_v9, 4 }
 0x38d   : > { %v1476_v43 = vrot.slane %v1102_v11, 4  ;;  %v1479_v56 = vsel %vm1116_vm1, %v1102_v11, %v1478_v52  ;;  %v1550_v11 = vrot.slane %v1507_v36, 4 }
 0x38e   : > { %v1487_v62 = vperm.slane %v1479_v56, %v3522_v21 }
 0x38f   : > { %v1477_v59 = vsel %vm1116_vm1, %v1476_v43, %v1086_v35  ;;  %v3899_v43 = vpop.permute.xlu1 %920 }
 0x390   : > { %v1483_v2 = vperm.slane %v1477_v59, %v3522_v21  ;;  %v1538_v19 = vrot.slane %v1487_v62, 4  ;;  %v1537_v42 = vsel %vm1116_vm1, %v1536_v1, %v1487_v62 }
 0x391   : > { %v1543_v52 = vperm.slane %v1537_v42, %v3878_v13 }
 0x392   : > { %v1526_v37 = vrot.slane %v1483_v2, 4  ;;  %v1525_v46 = vsel %vm1116_vm1, %v1524_v14, %v1483_v2  ;;  %v1539_v35 = vsel %vm1116_vm1, %v1499_v20, %v1538_v19  ;;  %v1554_v19 = vrot.slane %v1511_v17, 4 }
 0x393   : > { %v1531_v55 = vperm.slane %v1525_v46, %v3878_v13  ;;  %v1556_v56 = vrot.slane %v1543_v52, 4  ;;  %v1547_v59 = vperm.slane %v1539_v35, %v3878_v13  ;;  %v3904_v1 = vsel %vm1116_vm1, %v1543_v52, %v1558_v32  ;;  %v4664_v32 = vld [vmem:[#allocation18_spill] sm:$0xff] }
 0x394   : > { %4659 = vst [vmem:[#allocation14_spill] sm:$0xff] %v3904_v1  ;;  %v1527_v62 = vsel %vm1116_vm1, %v1495_v30, %v1526_v37  ;;  %v1088_v30 = vsel %vm1050_vm0, %v4664_v32, %v890_v7 }
 0x395   : > { %v3908_v42 = vsel %vm1116_vm1, %v1531_v55, %v1550_v11  ;;  %v1548_v14 = vrot.slane %v1531_v55, 4  ;;  %v3911_v2 = vsel %vm1116_vm1, %v1556_v56, %v1519_v9  ;;  %v1535_v20 = vperm.slane %v1527_v62, %v3878_v13 }
 0x396   : > { %4660 = vst [vmem:[#allocation43_spill] sm:$0xff] %v3908_v42  ;;  %v3915_v46 = vsel %vm1116_vm1, %v1547_v59, %v1562_v22  ;;  %v1560_v35 = vrot.slane %v1547_v59, 4  ;;  %v1702_v56 = vrot.slane %v1088_v30, 4  ;;  %v4668_v22 = vld [vmem:[#allocation29_spill] sm:$0xff] }
 0x397   : > { %4661 = vst [vmem:[#allocation17_spill] sm:$0xff] %v3911_v2  ;;  %v3918_v52 = vsel %vm1116_vm1, %v1548_v14, %v1507_v36  ;;  %v3923_v37 = vsel %vm1116_vm1, %v1535_v20, %v1554_v19  ;;  %v1552_v11 = vrot.slane %v1535_v20, 4  ;;  %v3931_v62 = vpop.permute.xlu1 %938  ;;  %v4669_v20 = vld [vmem:[#allocation21_spill] sm:$0xff] }
 0x398   : > { %4662 = vst [vmem:[#allocation39_spill] sm:$0xff] %v3915_v46  ;;  %v3926_v9 = vsel %vm1116_vm1, %v1560_v35, %v1523_v31  ;;  %v1099_v31 = vsel %vm1050_vm0, %v4669_v20, %v958_v39  ;;  %v4675_v46 = vld [vmem:[#allocation27_spill] sm:$0xff]  ;;  %v4676_v20 = vld [vmem:[#allocation32_spill] sm:$0xff] }
 0x399   : > { %4663 = vst [vmem:[#allocation52_spill] sm:$0xff] %v3918_v52  ;;  %v3929_v55 = vsel %vm1116_vm1, %v1552_v11, %v1511_v17  ;;  %v4670_v17 = vld [vmem:[#allocation16_spill] sm:$0xff]  ;;  %v1140_v11 = vrot.slane %v1099_v31, 4 }
 0x39a   : > { %4665 = vst [vmem:[#allocation18_spill] sm:$0xff] %v3923_v37  ;;  %v1083_v35 = vsel %vm1050_vm0, %v4670_v17, %v3867_v3  ;;  %v3963_v17 = vsel %vm1050_vm0, %v4676_v20, %v3550_v47  ;;  %v4683_v37 = vld [vmem:[#allocation26_spill] sm:$0xff] }
 0x39b   : > { %4666 = vst [vmem:[#allocation53_spill] sm:$0xff] %v3926_v9  ;;  %v988_v59 = vpop.permute.xlu2 %987  ;;  %v1142_v1 = vrot.slane %v1083_v35, 4  ;;  %v4671_v9 = vld [vmem:[#allocation19_spill] sm:$0xff]  ;;  %v1141_v3 = vsel %vm1116_vm1, %v1140_v11, %v1083_v35  ;;  %v4678_v11 = vld [vmem:[#allocation42_spill] sm:$0xff] }
 0x39c   : > { %4667 = vst [vmem:[#allocation54_spill] sm:$0xff] %v3929_v55  ;;  %v1104_v36 = vsel %vm1050_vm0, %v4668_v22, %v988_v59  ;;  %v1091_v59 = vsel %vm1050_vm0, %v4671_v9, %v909_v12  ;;  %v4672_v22 = vld [vmem:[#allocation40_spill] sm:$0xff]  ;;  %v1147_v35 = vperm.slane %v1141_v3, %v3522_v21 }
 0x39d   : > { %v1700_v14 = vrot.slane %v1104_v36, 4  ;;  %v3936_v7 = vsel %vm1116_vm1, %v1104_v36, %v1702_v56  ;;  %v1143_v56 = vsel %vm1116_vm1, %v1099_v31, %v1142_v1  ;;  %v4673_v36 = vld [vmem:[#allocation23_spill] sm:$0xff]  ;;  %v4677_v12 = vld [vmem:[#allocation36_spill] sm:$0xff]  ;;  %v1154_v9 = vrot.slane %v1091_v59, 4 }
 0x39e   : > { %v3968_v1 = vsel %vm1050_vm0, %v4677_v12, %v3624_v16  ;;  %v1151_v31 = vperm.slane %v1143_v56, %v3522_v21  ;;  %v1175_v16 = vperm.slane %v3553_v58, %v3878_v13  ;;  %v3980_v12 = vperm.slane %v3545_v4, %v3878_v13  ;;  %v4682_v4 = vld [vmem:[#allocation47_spill] sm:$0xff] }
 0x39f   : > { %v3939_v19 = vsel %vm1116_vm1, %v1700_v14, %v1088_v30  ;;  %v3946_v32 = vpop.permute.xlu1 %950  ;;  %v1085_v30 = vsel %vm1050_vm0, %v4673_v36, %v4672_v22  ;;  %v4674_v14 = vld [vmem:[#allocation46_spill] sm:$0xff]  ;;  %v3996_v2 = vperm.slane %v4682_v4, %v3878_v13  ;;  %v1190_v56 = vrot.slane %v1147_v35, 4 }
 0x3a0   : > { %v3957_v39 = vsel %vm1050_vm0, %v4675_v46, %v4674_v14  ;;  %v1366_v55 = vrot.slane %v1085_v30, 4  ;;  %4679 = vst [vmem:[#allocation29_spill] sm:$0xff] %v3980_v12  ;;  %v4680_v46 = vld [vmem:[#allocation41_spill] sm:$0xff]  ;;  %v1202_v58 = vrot.slane %v1151_v31, 4  ;;  %v1218_v42 = vrot.slane %v1175_v16, 4 }
 0x3a1   : > { %v3987_v3 = vsel %vm1050_vm0, %v4680_v46, %v3683_v25  ;;  %v1214_v28 = vrot.slane %v3980_v12, 4  ;;  %v4010_v4 = vperm.slane %v3606_v27, %v3878_v13  ;;  %v4685_v12 = vld [vmem:[#allocation28_spill] sm:$0xff] }
 0x3a7   : > { %v970_v22 = vpop.permute.xlu1 %969 }
 0x3a8   : > { %v1101_v52 = vsel %vm1050_vm0, %v4683_v37, %v970_v22  ;;  %v4014_v37 = vperm.slane %v3599_v63, %v3878_v13 }
 0x3ab   : > { %v1007_v36 = vpop.permute.xlu2 %1006 }
 0x3ac   : > { %v1107_v14 = vsel %vm1050_vm0, %v4678_v11, %v1007_v36 }
 0x3ad   : > { %v1152_v47 = vrot.slane %v1107_v14, 4  ;;  %v1155_v20 = vsel %vm1116_vm1, %v1107_v14, %v1154_v9  ;;  %v4681_v9 = vld [vmem:[#allocation25_spill] sm:$0xff] }
 0x3ae   : > { %v1163_v36 = vperm.slane %v1155_v20, %v3522_v21  ;;  %v1087_v11 = vsel %vm1050_vm0, %v4681_v9, %v3843_v10  ;;  %v4684_v10 = vld [vmem:[#allocation48_spill] sm:$0xff] }
 0x3af   : > { %v1153_v14 = vsel %vm1116_vm1, %v1152_v47, %v1091_v59  ;;  %v4005_v9 = vperm.slane %v4684_v10, %v3878_v13  ;;  %v1590_v22 = vrot.slane %v1087_v11, 4  ;;  %v4019_v10 = vperm.slane %v3609_v57, %v3878_v13 }
 0x3b0   : > { %v1159_v25 = vperm.slane %v1153_v14, %v3522_v21  ;;  %v1200_v46 = vrot.slane %v1163_v36, 4  ;;  %v1203_v20 = vsel %vm1116_vm1, %v1163_v36, %v1202_v58  ;;  %v1364_v36 = vrot.slane %v1101_v52, 4 }
 0x3b1   : > { %v4025_v27 = vperm.slane %v1203_v20, %v3878_v13 }
 0x3b2   : > { %v1188_v59 = vrot.slane %v1159_v25, 4  ;;  %v1191_v47 = vsel %vm1116_vm1, %v1159_v25, %v1190_v56  ;;  %v1201_v63 = vsel %vm1116_vm1, %v1200_v46, %v1151_v31  ;;  %v4045_v31 = vperm.slane %v3614_v50, %v3878_v13 }
 0x3b3   : > { %v982_v58 = vpop.permute.xlu1 %981  ;;  %v1199_v14 = vperm.slane %v1191_v47, %v3878_v13 }
 0x3b4   : > { %v1103_v56 = vsel %vm1050_vm0, %v4685_v12, %v982_v58  ;;  %v1189_v25 = vsel %vm1116_vm1, %v1188_v59, %v1147_v35  ;;  %v4037_v35 = vperm.slane %v3673_v60, %v3878_v13  ;;  %v4041_v12 = vperm.slane %v3668_v53, %v3878_v13  ;;  %v4686_v60 = vld [vmem:[#allocation20_spill] sm:$0xff] }
 0x3b5   : > { %v1588_v34 = vrot.slane %v1103_v56, 4  ;;  %v4029_v0 = vsel %vm1116_vm1, %v1103_v56, %v1590_v22  ;;  %v1219_v47 = vsel %vm1116_vm1, %v1199_v14, %v1218_v42  ;;  %v1216_v29 = vrot.slane %v1199_v14, 4 }
 0x3b6   : > { %2021 = vrot.lane.b32.xlu2 %v1219_v47, %s2938_s22  ;;  %v4033_v57 = vperm.slane %v1189_v25, %v3878_v13  ;;  %v1367_v42 = vsel %vm1116_vm1, %v1101_v52, %v1366_v55  ;;  %v4054_v59 = vperm.slane %v3676_v45, %v3878_v13  ;;  %v1093_v53 = vsel %vm1050_vm0, %v4686_v60, %v3899_v43  ;;  %v4687_v25 = vld [vmem:[#allocation37_spill] sm:$0xff]  ;;  %s2956_s22 = smov 34  }
 0x3b7   : > { %v4049_v46 = vsel %vm1116_vm1, %v1588_v34, %v1087_v11  ;;  %v1217_v20 = vsel %vm1116_vm1, %v1216_v29, %v1175_v16  ;;  %v1365_v22 = vsel %vm1116_vm1, %v1364_v36, %v1085_v30  ;;  %v1207_v34 = vperm.slane %v1201_v63, %v3878_v13  ;;  %v4688_v16 = vld [vmem:[#allocation49_spill] sm:$0xff] }
 0x3b8   : > { %2017 = vrot.lane.b32.xlu1 %v1217_v20, %s2939_s10  ;;  %v1215_v50 = vsel %vm1116_vm1, %v4033_v57, %v1214_v28  ;;  %v1224_v29 = vrot.slane %v4025_v27, 4  ;;  %v1222_v45 = vrot.slane %v3996_v2, 4  ;;  %v1226_v52 = vrot.slane %v4005_v9, 4  ;;  %s2957_s10 = smov 44  }
 0x3b9   : > { %2013 = vrot.lane.b32.xlu0 %v1215_v50, %s2940_s25  ;;  %v1375_v43 = vperm.slane %v1367_v42, %v3522_v21  ;;  %v4070_v30 = vperm.slane %v3681_v49, %v3878_v13  ;;  %v1378_v11 = vrot.slane %v1093_v53, 4  ;;  %v1371_v36 = vperm.slane %v1365_v22, %v3522_v21  ;;  %s2958_s25 = smov 42  }
 0x3ba   : > { %v1450_v14 = vrot.slane %v4041_v12, 4  ;;  %v1220_v47 = vrot.slane %v1207_v34, 4  ;;  %v1442_v42 = vrot.slane %v4037_v35, 4  ;;  %v1446_v49 = vrot.slane %v4054_v59, 4 }
 0x3bb   : > { %v1019_v58 = vpop.permute.xlu2 %1018  ;;  %v1225_v50 = vsel %vm1116_vm1, %v1224_v29, %v4005_v9  ;;  %v4086_v22 = vperm.slane %v3710_v61, %v3878_v13  ;;  %v1426_v28 = vrot.slane %v1375_v43, 4  ;;  %v1414_v56 = vrot.slane %v1371_v36, 4 }
 0x3bc   : > { %v1109_v63 = vsel %vm1050_vm0, %v4687_v25, %v1019_v58  ;;  %v1438_v58 = vrot.slane %v4070_v30, 4  ;;  %v4092_v25 = vperm.slane %v3717_v38, %v3878_v13  ;;  %v1223_v29 = vsel %vm1116_vm1, %v1207_v34, %v1222_v45 }
 0x3bd   : > { %v1376_v20 = vrot.slane %v1109_v63, 4  ;;  %v1379_v60 = vsel %vm1116_vm1, %v1109_v63, %v1378_v11  ;;  %v4098_v61 = vperm.slane %v3720_v51, %v3878_v13  ;;  %v4109_v51 = vperm.slane %v3740_v48, %v3878_v13 }
 0x3be   : > { %v1387_v55 = vperm.slane %v1379_v60, %v3522_v21  ;;  %2033 = vrot.lane.b32.xlu2 %v1225_v50, %s2941_s17  ;;  %v1221_v50 = vsel %vm1116_vm1, %v1220_v47, %v3996_v2  ;;  %v4183_v9 = vperm.slane %v3780_v6, %v3878_v13  ;;  %s2959_s17 = smov 40  }
 0x3bf   : > { %v1377_v11 = vsel %vm1116_vm1, %v1376_v20, %v1093_v53  ;;  %v1084_v53 = vsel %vm1050_vm0, %v4688_v16, %v3839_v8 }
 0x3c0   : > { %v1383_v63 = vperm.slane %v1377_v11, %v3522_v21  ;;  %v1424_v60 = vrot.slane %v1387_v55, 4  ;;  %2029 = vrot.lane.b32.xlu1 %v1223_v29, %s2942_s8  ;;  %v1427_v38 = vsel %vm1116_vm1, %v1387_v55, %v1426_v28  ;;  %v4117_v55 = vperm.slane %v3727_v44, %v3878_v13  ;;  %s2960_s8 = smov 50  }
 0x3c1   : > { %2025 = vrot.lane.b32.xlu0 %v1221_v50, %s2943_s4  ;;  %v1435_v34 = vperm.slane %v1427_v38, %v3878_v13  ;;  %v1254_v47 = vrot.slane %v1084_v53, 4  ;;  %v4126_v29 = vperm.slane %v3747_v33, %v3878_v13  ;;  %s2961_s4 = smov 48  }
 0x3c2   : > { %v1412_v20 = vrot.slane %v1383_v63, 4  ;;  %v1415_v11 = vsel %vm1116_vm1, %v1383_v63, %v1414_v56  ;;  %v1425_v2 = vsel %vm1116_vm1, %v1424_v60, %v1375_v43  ;;  %v4130_v43 = vperm.slane %v3750_v23, %v3878_v13 }
 0x3c3   : > { %v1423_v8 = vperm.slane %v1415_v11, %v3878_v13  ;;  %v1448_v28 = vrot.slane %v1435_v34, 4  ;;  %v1431_v16 = vperm.slane %v1425_v2, %v3878_v13  ;;  %v4122_v48 = vsel %vm1116_vm1, %v1435_v34, %v1450_v14  ;;  %v1000_v34 = vpop.permute.xlu1 %999 }
 0x3c4   : > { %v1413_v44 = vsel %vm1116_vm1, %v1412_v20, %v1371_v36  ;;  %v4135_v56 = vperm.slane %v3759_v24, %v3878_v13  ;;  %v1338_v14 = vrot.slane %v4109_v51, 4  ;;  %v4151_v36 = vperm.slane %v3770_v18, %v3878_v13 }
 0x3c5   : > { %v1419_v63 = vperm.slane %v1413_v44, %v3878_v13  ;;  %v4140_v60 = vsel %vm1116_vm1, %v1423_v8, %v1442_v42  ;;  %v1440_v50 = vrot.slane %v1423_v8, 4  ;;  %v4144_v33 = vsel %vm1116_vm1, %v1448_v28, %v4041_v12  ;;  %v4692_v44 = vld [vmem:[#allocation45_spill] sm:$0xff] }
 0x3c6   : > { %v4147_v23 = vsel %vm1116_vm1, %v1431_v16, %v1446_v49  ;;  %v4689_v24 = vrot.slane %v3968_v1, 4  ;;  %v1444_v11 = vrot.slane %v1431_v16, 4  ;;  %v1255_v12 = vsel %vm1116_vm1, %v3968_v1, %v1254_v47  ;;  %v4690_v49 = vld [vmem:[#allocation22_spill] sm:$0xff] }
 0x3c7   : > { %v1436_v20 = vrot.slane %v1419_v63, 4  ;;  %v4157_v42 = vsel %vm1116_vm1, %v1419_v63, %v1438_v58  ;;  %v1096_v2 = vsel %vm1050_vm0, %v4690_v49, %v3931_v62  ;;  %v1227_v18 = vsel %vm1116_vm1, %v4025_v27, %v1226_v52 }
 0x3c8   : > { %v1253_v38 = vsel %vm1116_vm1, %v4689_v24, %v1084_v53  ;;  %v4170_v53 = vsel %vm1116_vm1, %v1440_v50, %v4037_v35  ;;  %v1334_v58 = vrot.slane %v4130_v43, 4  ;;  %v4179_v62 = vsel %vm1116_vm1, %v1444_v11, %v4054_v59  ;;  %v4691_v35 = vld [vmem:[#allocation31_spill] sm:$0xff]  ;;  %v4693_v11 = vld [vmem:[#allocation30_spill] sm:$0xff] }
 0x3c9   : > { %2037 = vrot.lane.b32.xlu0 %v1227_v18, %s2944_s30  ;;  %v4175_v1 = vsel %vm1116_vm1, %v1436_v20, %v4070_v30  ;;  %v1711_v27 = vperm.slane %v3936_v7, %v3522_v21  ;;  %v1106_v52 = vsel %vm1050_vm0, %v4691_v35, %v1000_v34  ;;  %v4192_v30 = vperm.slane %v3777_v40, %v3878_v13  ;;  %s2962_s30 = smov 46  }
 0x3ca   : > { %v4195_v28 = vperm.slane %v1253_v38, %v3522_v21  ;;  %v4198_v59 = vperm.slane %v1255_v12, %v3522_v21  ;;  %v1714_v6 = vrot.slane %v1096_v2, 4  ;;  %v1707_v7 = vperm.slane %v3939_v19, %v3522_v21 }
 0x3cb   : > { %v1037_v16 = vpop.permute.xlu2 %1036  ;;  %v4207_v40 = vperm.slane %v3786_v26, %v3878_v13  ;;  %v1924_v24 = vrot.slane %v1106_v52, 4  ;;  %v1092_v12 = vsel %vm1050_vm0, %v4693_v11, %v3851_v41  ;;  %v1762_v19 = vrot.slane %v1711_v27, 4 }
 0x3cc   : > { %v1112_v63 = vsel %vm1050_vm0, %v4692_v44, %v1037_v16  ;;  %v1302_v26 = vrot.slane %v4195_v28, 4  ;;  %v1314_v35 = vrot.slane %v4198_v59, 4  ;;  %v4694_v16 = vld [vmem:[#allocation24_spill] sm:$0xff]  ;;  %v4695_v20 = vrot.slane %v3957_v39, 4 }
 0x3cd   : > { %v1712_v38 = vrot.slane %v1112_v63, 4  ;;  %v1715_v34 = vsel %vm1116_vm1, %v1112_v63, %v1714_v6  ;;  %v4222_v44 = vsel %vm1050_vm0, %v4694_v16, %v3946_v32  ;;  %v1750_v63 = vrot.slane %v1707_v7, 4 }
 0x3ce   : > { %v1723_v49 = vperm.slane %v1715_v34, %v3522_v21  ;;  %v1266_v34 = vrot.slane %v1092_v12, 4  ;;  %v1925_v18 = vsel %vm1116_vm1, %v1924_v24, %v3957_v39  ;;  %v1927_v50 = vsel %vm1116_vm1, %v1106_v52, %v4695_v20 }
 0x3cf   : > { %v1713_v6 = vsel %vm1116_vm1, %v1712_v38, %v1096_v2  ;;  %v1938_v32 = vrot.slane %v4222_v44, 4  ;;  %v4696_v24 = vrot.slane %v4019_v10, 4  ;;  %v4244_v52 = vperm.slane %v1925_v18, %v3522_v21 }
 0x3d0   : > { %v1719_v45 = vperm.slane %v1713_v6, %v3522_v21  ;;  %v1760_v41 = vrot.slane %v1723_v49, 4  ;;  %v1763_v11 = vsel %vm1116_vm1, %v1723_v49, %v1762_v19  ;;  %v4247_v20 = vperm.slane %v1927_v50, %v3522_v21 }
 0x3d1   : > { %v1771_v47 = vperm.slane %v1763_v11, %v3878_v13 }
 0x3d2   : > { %v1748_v16 = vrot.slane %v1719_v45, 4  ;;  %v1751_v2 = vsel %vm1116_vm1, %v1719_v45, %v1750_v63  ;;  %v1761_v38 = vsel %vm1116_vm1, %v1760_v41, %v1711_v27  ;;  %v4697_v45 = vld [vmem:[#allocation33_spill] sm:$0xff] }
 0x3d3   : > { %v1013_v6 = vpop.permute.xlu1 %1012  ;;  %v1759_v19 = vperm.slane %v1751_v2, %v3878_v13  ;;  %v1784_v49 = vrot.slane %v1771_v47, 4  ;;  %v1767_v8 = vperm.slane %v1761_v38, %v3878_v13  ;;  %v4241_v39 = vsel %vm1116_vm1, %v1771_v47, %v4696_v24 }
 0x3d4   : > { %v1108_v27 = vsel %vm1050_vm0, %v4697_v45, %v1013_v6  ;;  %v1749_v63 = vsel %vm1116_vm1, %v1748_v16, %v1707_v7  ;;  %v4698_v38 = vrot.slane %v4045_v31, 4  ;;  %v4699_v6 = vrot.slane %v4014_v37, 4 }
 0x3d5   : > { %v1264_v41 = vrot.slane %v1108_v27, 4  ;;  %v1267_v11 = vsel %vm1116_vm1, %v1108_v27, %v1266_v34  ;;  %v1755_v2 = vperm.slane %v1749_v63, %v3878_v13  ;;  %v1776_v24 = vrot.slane %v1759_v19, 4 }
 0x3d6   : > { %v4257_v47 = vsel %vm1116_vm1, %v1759_v19, %v4698_v38  ;;  %v1275_v18 = vperm.slane %v1267_v11, %v3522_v21  ;;  %v4262_v50 = vsel %vm1116_vm1, %v1784_v49, %v4019_v10  ;;  %v4267_v7 = vsel %vm1116_vm1, %v1767_v8, %v4699_v6 }
 0x3d7   : > { %v1265_v34 = vsel %vm1116_vm1, %v1264_v41, %v1092_v12  ;;  %v1772_v16 = vrot.slane %v1755_v2, 4  ;;  %v4700_v45 = vrot.slane %v4010_v4, 4  ;;  %v1780_v63 = vrot.slane %v1767_v8, 4 }
 0x3d8   : > { %v1271_v19 = vperm.slane %v1265_v34, %v3522_v21  ;;  %v1312_v11 = vrot.slane %v1275_v18, 4  ;;  %v1315_v10 = vsel %vm1116_vm1, %v1275_v18, %v1314_v35  ;;  %v4279_v49 = vsel %vm1116_vm1, %v1776_v24, %v4045_v31  ;;  %v4701_v34 = vld [vmem:[#allocation44_spill] sm:$0xff] }
 0x3d9   : > { %v4273_v27 = vsel %vm1116_vm1, %v1755_v2, %v4700_v45  ;;  %v4283_v38 = vperm.slane %v4029_v0, %v3522_v21  ;;  %v1323_v12 = vperm.slane %v1315_v10, %v3878_v13  ;;  %v4288_v41 = vsel %vm1116_vm1, %v1772_v16, %v4010_v4 }
 0x3da   : > { %v4292_v8 = vsel %vm1116_vm1, %v1780_v63, %v4014_v37  ;;  %v4296_v35 = vperm.slane %v4049_v46, %v3522_v21  ;;  %v1300_v31 = vrot.slane %v1271_v19, 4  ;;  %v1303_v2 = vsel %vm1116_vm1, %v1271_v19, %v1302_v26 }
 0x3db   : > { %v1313_v0 = vsel %vm1116_vm1, %v1312_v11, %v4198_v59  ;;  %v1986_v18 = vrot.slane %v4247_v20, 4  ;;  %v1049_v24 = vpop.permute.xlu2 %1048  ;;  %v1311_v4 = vperm.slane %v1303_v2, %v3878_v13  ;;  %v4307_v37 = vsel %vm1116_vm1, %v1323_v12, %v1338_v14 }
 0x3dc   : > { %v1319_v6 = vperm.slane %v1313_v0, %v3878_v13  ;;  %v1974_v46 = vrot.slane %v4244_v52, 4  ;;  %v1114_v26 = vsel %vm1050_vm0, %v4701_v34, %v1049_v24  ;;  %v1301_v59 = vsel %vm1116_vm1, %v1300_v31, %v4195_v28 }
 0x3dd   : > { %v1336_v16 = vrot.slane %v1323_v12, 4  ;;  %v1936_v45 = vrot.slane %v1114_v26, 4  ;;  %v1939_v63 = vsel %vm1116_vm1, %v1114_v26, %v1938_v32  ;;  %v1328_v19 = vrot.slane %v1311_v4, 4 }
 0x3de   : > { %v1307_v11 = vperm.slane %v1301_v59, %v3878_v13  ;;  %v1947_v10 = vperm.slane %v1939_v63, %v3522_v21  ;;  %v1335_v14 = vsel %vm1116_vm1, %v1319_v6, %v1334_v58  ;;  %v1332_v2 = vrot.slane %v1319_v6, 4 }
 0x3df   : > { %v4702_v0 = vrot.slane %v4126_v29, 4  ;;  %v1937_v28 = vsel %vm1116_vm1, %v1936_v45, %v4222_v44  ;;  %v1329_v32 = vsel %vm1116_vm1, %v1328_v19, %v4126_v29  ;;  %v4703_v12 = vrot.slane %v4135_v56, 4 }
 0x3e0   : > { %v1324_v34 = vrot.slane %v1307_v11, 4  ;;  %v1943_v26 = vperm.slane %v1937_v28, %v3522_v21  ;;  %v1984_v59 = vrot.slane %v1947_v10, 4  ;;  %2049 = vrot.lane.b32.xlu0 %v1329_v32, %s2945_s7  ;;  %v1333_v58 = vsel %vm1116_vm1, %v1332_v2, %v4130_v43  ;;  %s2963_s7 = smov 56  }
 0x3e1   : > { %v1331_v24 = vsel %vm1116_vm1, %v1311_v4, %v4702_v0  ;;  %v1327_v31 = vsel %vm1116_vm1, %v1307_v11, %v4703_v12  ;;  %v4335_v44 = vsel %vm1116_vm1, %v1336_v16, %v4109_v51  ;;  %v4340_v29 = vsel %vm1050_vm0, %v3641_v5, %v3847_v54 }
 0x3e2   : > { %2045 = vrot.lane.b32.xlu2 %v1327_v31, %s2946_s29  ;;  %v1325_v4 = vsel %vm1116_vm1, %v1324_v34, %v4135_v56  ;;  %v1998_v6 = vrot.slane %v4207_v40, 4  ;;  %v1987_v45 = vsel %vm1116_vm1, %v1947_v10, %v1986_v18  ;;  %v1972_v63 = vrot.slane %v1943_v26, 4  ;;  %v4704_v18 = vld [vmem:[#allocation35_spill] sm:$0xff]  ;;  %s2964_s29 = smov 54  }
 0x3e3   : > { %2041 = vrot.lane.b32.xlu1 %v1325_v4, %s2947_s5  ;;  %v1975_v43 = vsel %vm1116_vm1, %v1943_v26, %v1974_v46  ;;  %v1985_v51 = vsel %vm1116_vm1, %v1984_v59, %v4247_v20  ;;  %v1995_v16 = vperm.slane %v1987_v45, %v3878_v13  ;;  %v1638_v5 = vrot.slane %v4296_v35, 4  ;;  %v1031_v19 = vpop.permute.xlu1 %1030  ;;  %s2965_s5 = smov 52  }
 0x3e4   : > { %v1650_v54 = vrot.slane %v4283_v38, 4  ;;  %v1983_v56 = vperm.slane %v1975_v43, %v3878_v13  ;;  %v1991_v11 = vperm.slane %v1985_v51, %v3878_v13  ;;  %v1111_v10 = vsel %vm1050_vm0, %v4704_v18, %v1031_v19 }
 0x3e5   : > { %v1973_v46 = vsel %vm1116_vm1, %v1972_v63, %v4244_v52  ;;  %v4705_v2 = vrot.slane %v4151_v36, 4  ;;  %v2008_v0 = vrot.slane %v1995_v16, 4  ;;  %v1600_v28 = vrot.slane %v1111_v10, 4 }
 0x3e6   : > { %v4706_v32 = vrot.slane %v3963_v17, 4  ;;  %v2000_v31 = vrot.slane %v1983_v56, 4  ;;  %v1979_v34 = vperm.slane %v1973_v46, %v3878_v13  ;;  %v4707_v59 = vrot.slane %v4183_v9, 4 }
 0x3e7   : > { %v4361_v20 = vsel %vm1116_vm1, %v1995_v16, %v4705_v2  ;;  %v2004_v4 = vrot.slane %v1991_v11, 4  ;;  %v4708_v45 = vrot.slane %v4192_v30, 4  ;;  %v1601_v43 = vsel %vm1116_vm1, %v1600_v28, %v3963_v17 }
 0x3e8   : > { %v1603_v12 = vsel %vm1116_vm1, %v1111_v10, %v4706_v32  ;;  %v4371_v52 = vsel %vm1116_vm1, %v1991_v11, %v4707_v59  ;;  %v4382_v51 = vsel %vm1116_vm1, %v2000_v31, %v4192_v30  ;;  %v4385_v16 = vsel %vm1116_vm1, %v1979_v34, %v1998_v6  ;;  %2061 = vrot.lane.b32.xlu0 %v1335_v14, %s2948_s11  ;;  %s2966_s11 = smov 62  }
 0x3e9   : > { %v1611_v26 = vperm.slane %v1603_v12, %v3522_v21  ;;  %v4376_v63 = vsel %vm1116_vm1, %v1983_v56, %v4708_v45  ;;  %v1996_v19 = vrot.slane %v1979_v34, 4  ;;  %v1607_v18 = vperm.slane %v1601_v43, %v3522_v21 }
 0x3ea   : > { %2057 = vrot.lane.b32.xlu2 %v1333_v58, %s2949_s19  ;;  %v4391_v17 = vsel %vm1116_vm1, %v2004_v4, %v4183_v9  ;;  %v1670_v30 = vrot.slane %v4098_v61, 4  ;;  %v4401_v46 = vsel %vm1116_vm1, %v2008_v0, %v4151_v36  ;;  %v1814_v14 = vrot.slane %v4340_v29, 4  ;;  %s2967_s19 = smov 60  }
 0x3eb   : > { %v1648_v10 = vrot.slane %v1611_v26, 4  ;;  %v1651_v56 = vsel %vm1116_vm1, %v1611_v26, %v1650_v54  ;;  %v4397_v6 = vsel %vm1116_vm1, %v1996_v19, %v4207_v40  ;;  %v1636_v58 = vrot.slane %v1607_v18, 4  ;;  %2053 = vrot.lane.b32.xlu1 %v1331_v24, %s2950_s20  ;;  %s2968_s20 = smov 58  }
 0x3ec   : > { %v1659_v11 = vperm.slane %v1651_v56, %v3878_v13  ;;  %v1639_v9 = vsel %vm1116_vm1, %v1607_v18, %v1638_v5  ;;  %v4709_v40 = vrot.slane %v4086_v22, 4  ;;  %v1662_v24 = vrot.slane %v4117_v55, 4 }
 0x3ed   : > { %v1649_v54 = vsel %vm1116_vm1, %v1648_v10, %v4283_v38  ;;  %v1647_v2 = vperm.slane %v1639_v9, %v3878_v13  ;;  %v1637_v0 = vsel %vm1116_vm1, %v1636_v58, %v4296_v35  ;;  %v1666_v5 = vrot.slane %v4092_v25, 4 }
 0x3ee   : > { %v1655_v28 = vperm.slane %v1649_v54, %v3878_v13  ;;  %v4412_v32 = vsel %vm1116_vm1, %v1659_v11, %v4709_v40  ;;  %v1672_v36 = vrot.slane %v1659_v11, 4  ;;  %v1643_v38 = vperm.slane %v1637_v0, %v3878_v13  ;;  %v4713_v54 = vld [vmem:[#allocation50_spill] sm:$0xff] }
 0x3ef   : > { %v1664_v12 = vrot.slane %v1647_v2, 4  ;;  %v1812_v26 = vrot.slane %v3987_v3, 4  ;;  %v1815_v59 = vsel %vm1116_vm1, %v3987_v3, %v1814_v14  ;;  %v4426_v4 = vsel %vm1116_vm1, %v1647_v2, %v1666_v5  ;;  %v4710_v3 = vld [vmem:[#allocation34_spill] sm:$0xff] }
 0x3f0   : > { %v4420_v31 = vsel %vm1116_vm1, %v1655_v28, %v1670_v30  ;;  %v1668_v34 = vrot.slane %v1655_v28, 4  ;;  %v4430_v35 = vsel %vm1116_vm1, %v1672_v36, %v4086_v22  ;;  %v4437_v43 = vsel %vm1116_vm1, %v1643_v38, %v1662_v24  ;;  %2073 = vrot.lane.b32.xlu0 %v4175_v1, %s2951_s27  ;;  %v4711_v1 = vld [vmem:[#allocation38_spill] sm:$0xff]  ;;  %v4714_v28 = vld [vmem:[#allocation51_spill] sm:$0xff]  ;;  %s2969_s27 = smov 68  }
 0x3f1   : > { %v4434_v45 = vsel %vm1116_vm1, %v1664_v12, %v4092_v25  ;;  %v1660_v19 = vrot.slane %v1643_v38, 4  ;;  %v1097_v10 = vsel %vm1050_vm0, %v4710_v3, %v3871_v15  ;;  %v1813_v22 = vsel %vm1116_vm1, %v1812_v26, %v4340_v29  ;;  %v4712_v29 = vld [vmem:[#allocation13_spill] sm:$0xff]  ;;  %v4715_v36 = vld [vmem:[#allocation15_spill] sm:$0xff] }
 0x3f2   : > { %v4441_v18 = vsel %vm1116_vm1, %v1668_v34, %v4098_v61  ;;  %2069 = vrot.lane.b32.xlu2 %v4307_v37, %s2952_s6  ;;  %v1823_v61 = vperm.slane %v1815_v59, %v3522_v21  ;;  %v1826_v56 = vrot.slane %v1097_v10, 4  ;;  %v1819_v30 = vperm.slane %v1813_v22, %v3522_v21  ;;  %s2970_s6 = smov 66  }
 0x3f3   : > { %v4452_v25 = vsel %vm1116_vm1, %v1660_v19, %v4117_v55  ;;  %2065 = vrot.lane.b32.xlu1 %v4335_v44, %s2953_s21  ;;  %v1043_v15 = vpop.permute.xlu1 %1042  ;;  %v1859_v58 = vperm.slane %v4712_v29, %v3878_v13  ;;  %v1847_v2 = vperm.slane %v4713_v54, %v3878_v13  ;;  %v1843_v40 = vperm.slane %v4714_v28, %v3878_v13  ;;  %v4716_v54 = vld [vmem:[#allocation43_spill] sm:$0xff]  ;;  %v4722_v28 = vld [vmem:[#allocation53_spill] sm:$0xff]  ;;  %s2971_s21 = smov 64  }
 0x3f4   : > { %v1113_v11 = vsel %vm1050_vm0, %v4711_v1, %v1043_v15  ;;  %v1874_v55 = vrot.slane %v1823_v61, 4  ;;  %v1855_v0 = vperm.slane %v4715_v36, %v3878_v13  ;;  %v1862_v24 = vrot.slane %v1819_v30, 4 }
 0x3f5   : > { %v1824_v37 = vrot.slane %v1113_v11, 4  ;;  %v1827_v14 = vsel %vm1116_vm1, %v1113_v11, %v1826_v56  ;;  %v1898_v26 = vrot.slane %v1859_v58, 4  ;;  %v1890_v3 = vrot.slane %v1847_v2, 4 }
 0x3f6   : > { %v1835_v9 = vperm.slane %v1827_v14, %v3522_v21  ;;  %v1886_v15 = vrot.slane %v1843_v40, 4  ;;  %v1894_v1 = vrot.slane %v1855_v0, 4  ;;  %vm2292_vm0 = vcmask 244736  }
 0x3f7   : > { %v1825_v44 = vsel %vm1116_vm1, %v1824_v37, %v1097_v10 }
 0x3f8   : > { %v1831_v5 = vperm.slane %v1825_v44, %v3522_v21  ;;  %v1872_v12 = vrot.slane %v1835_v9, 4  ;;  %2085 = vrot.lane.b32.xlu0 %v4140_v60, %s2954_s28  ;;  %v1875_v38 = vsel %vm1116_vm1, %v1835_v9, %v1874_v55  ;;  %v4717_v44 = vld [vmem:[#allocation52_spill] sm:$0xff]  ;;  %s2972_s28 = smov 74  }
 0x3f9   : > { %v1883_v34 = vperm.slane %v1875_v38, %v3878_v13 }
 0x3fa   : > { %2081 = vrot.lane.b32.xlu2 %v4170_v53, %s2955_s9  ;;  %v1860_v59 = vrot.slane %v1831_v5, 4  ;;  %v1873_v19 = vsel %vm1116_vm1, %v1872_v12, %v1823_v61  ;;  %v1863_v21 = vsel %vm1116_vm1, %v1831_v5, %v1862_v24  ;;  %s2973_s9 = smov 72  }
 0x3fb   : > { %2077 = vrot.lane.b32.xlu1 %v4157_v42, %s2956_s22  ;;  %v1879_v10 = vperm.slane %v1873_v19, %v3878_v13  ;;  %v1871_v60 = vperm.slane %v1863_v21, %v3878_v13  ;;  %v4481_v53 = vsel %vm1116_vm1, %v1883_v34, %v1898_v26  ;;  %v1896_v22 = vrot.slane %v1883_v34, 4  ;;  %s2974_s22 = smov 70  }
 0x3fc   : > { %v1861_v56 = vsel %vm1116_vm1, %v1860_v59, %v1819_v30 }
 0x3fd   : > { %v1867_v11 = vperm.slane %v1861_v56, %v3878_v13  ;;  %v1892_v42 = vrot.slane %v1879_v10, 4  ;;  %v4486_v61 = vsel %vm1116_vm1, %v1871_v60, %v1890_v3  ;;  %v1888_v37 = vrot.slane %v1871_v60, 4 }
 0x3fe   : > { %v4489_v14 = vsel %vm1116_vm1, %v1896_v22, %v1859_v58  ;;  %v4492_v29 = vsel %vm1116_vm1, %v1879_v10, %v1894_v1 }
 0x3ff   : > { %v4495_v55 = vsel %vm1116_vm1, %v1867_v11, %v1886_v15  ;;  %v1884_v9 = vrot.slane %v1867_v11, 4  ;;  %v4498_v30 = vsel %vm1116_vm1, %v1892_v42, %v1855_v0  ;;  %v4501_v13 = vsel %vm1116_vm1, %v1888_v37, %v1847_v2  ;;  %v4720_v2 = vld [vmem:[#allocation54_spill] sm:$0xff] }
 0x400   : > { %2097 = vrot.lane.b32.xlu0 %v4144_v33, %s2957_s10  ;;  %v4718_v33 = vld [vmem:[#allocation17_spill] sm:$0xff]  ;;  %s2975_s10 = smov 80  }
 0x401   : > { %v4506_v58 = vsel %vm1116_vm1, %v1884_v9, %v1843_v40  ;;  %v4723_v40 = vld [vmem:[#allocation14_spill] sm:$0xff] }
 0x402   : > { %2093 = vrot.lane.b32.xlu2 %v4147_v23, %s2958_s25  ;;  %v4719_v23 = vld [vmem:[#allocation18_spill] sm:$0xff]  ;;  %s2976_s25 = smov 78  }
 0x403   : > { %2089 = vrot.lane.b32.xlu1 %v4179_v62, %s2959_s17  ;;  %v4721_v62 = vld [vmem:[#allocation39_spill] sm:$0xff]  ;;  %s2977_s17 = smov 76  }
 0x408   : > { %2109 = vrot.lane.b32.xlu0 %v4716_v54, %s2960_s8  ;;  %s2978_s8 = smov 86  }
 0x40a   : > { %2105 = vrot.lane.b32.xlu2 %v4717_v44, %s2961_s4  ;;  %s2979_s4 = smov 84  }
 0x40b   : > { %2101 = vrot.lane.b32.xlu1 %v4122_v48, %s2962_s30  ;;  %v1212_v48 = vrot.slane %v4033_v57, 4  ;;  %s2980_s30 = smov 82  }
 0x410   : > { %2121 = vrot.lane.b32.xlu0 %v4718_v33, %s2963_s7  ;;  %v2022_v36 = vpop.permute.xlu2 %2021  ;;  %s2981_s7 = smov 92  }
 0x412   : > { %2117 = vrot.lane.b32.xlu2 %v4719_v23, %s2964_s29  ;;  %s2982_s29 = smov 90  }
 0x413   : > { %2113 = vrot.lane.b32.xlu1 %v4720_v2, %s2965_s5  ;;  %s2983_s5 = smov 88  }
 0x418   : > { %2133 = vrot.lane.b32.xlu0 %v4721_v62, %s2966_s11  ;;  %s2984_s11 = smov 98  }
 0x41a   : > { %2129 = vrot.lane.b32.xlu2 %v4722_v28, %s2967_s19  ;;  %s2985_s19 = smov 96  }
 0x41b   : > { %2125 = vrot.lane.b32.xlu1 %v4723_v40, %s2968_s20  ;;  %s2986_s20 = smov 94  }
 0x420   : > { %2145 = vrot.lane.b32.xlu0 %v4434_v45, %s2969_s27  ;;  %v4724_v45 = vld [vmem:[#allocation29_spill] sm:$0xff]  ;;  %s2987_s27 = smov 104  }
 0x422   : > { %2141 = vrot.lane.b32.xlu2 %v4437_v43, %s2970_s6  ;;  %v1213_v43 = vsel %vm1116_vm1, %v1212_v48, %v4724_v45  ;;  %s2988_s6 = smov 102   ;;  %vm2294_vm1 = vcmask 261120  }
 0x423   : > { %2137 = vrot.lane.b32.xlu1 %v4452_v25, %s2971_s21  ;;  %s2989_s21 = smov 100  }
 0x428   : > { %2157 = vrot.lane.b32.xlu0 %v4420_v31, %s2972_s28  ;;  %v2034_v31 = vpop.permute.xlu2 %2033  ;;  %s2990_s28 = smov 110  }
 0x42a   : > { %2153 = vrot.lane.b32.xlu2 %v4441_v18, %s2973_s9  ;;  %v2018_v0 = vpop.permute.xlu1 %2017  ;;  %s2991_s9 = smov 108  }
 0x42b   : > { %2149 = vrot.lane.b32.xlu1 %v4426_v4, %s2974_s22  ;;  %v2014_v24 = vpop.permute.xlu0 %2013  ;;  %s2992_s22 = smov 106  }
 0x42c   : > { %v2265_v25 = vsel %vm2264_vm2, %v1213_v43, %v2014_v24  ;;  %vm2296_vm2 = vcmask 277504  }
 0x42d   : > { %v2267_v57 = vsel %vm2266_vm3, %v2265_v25, %v2018_v0  ;;  %vm2298_vm3 = vcmask 293888  }
 0x42e   : > { %v2269_v5 = vsel %vm2268_vm4, %v2267_v57, %v2022_v36  ;;  %vm2300_vm4 = vcmask 310272  }
 0x430   : > { %2169 = vrot.lane.b32.xlu0 %v4288_v41, %s2975_s10  ;;  %s2993_s10 = smov 116  }
 0x432   : > { %2165 = vrot.lane.b32.xlu2 %v4412_v32, %s2976_s25  ;;  %v2030_v18 = vpop.permute.xlu1 %2029  ;;  %s2994_s25 = smov 114  }
 0x433   : > { %2161 = vrot.lane.b32.xlu1 %v4430_v35, %s2977_s17  ;;  %v2026_v4 = vpop.permute.xlu0 %2025  ;;  %s2995_s17 = smov 112  }
 0x434   : > { %v2271_v12 = vsel %vm2270_vm5, %v2269_v5, %v2026_v4  ;;  %vm2302_vm5 = vcmask 326656  }
 0x435   : > { %v2273_v38 = vsel %vm2272_vm6, %v2271_v12, %v2030_v18  ;;  %vm2304_vm6 = vcmask 343040  }
 0x436   : > { %v2275_v34 = vsel %vm2274_vm7, %v2273_v38, %v2034_v31  ;;  %vm2306_vm7 = vcmask 359424  }
 0x438   : > { %2181 = vrot.lane.b32.xlu0 %v4257_v47, %s2978_s8  ;;  %s2996_s8 = smov 122  }
 0x43a   : > { %2177 = vrot.lane.b32.xlu2 %v4279_v49, %s2979_s4  ;;  %s2997_s4 = smov 120  }
 0x43b   : > { %2173 = vrot.lane.b32.xlu1 %v4273_v27, %s2980_s30  ;;  %v2038_v32 = vpop.permute.xlu0 %2037  ;;  %s2998_s30 = smov 118  }
 0x43c   : > { %v2046_v41 = vpop.permute.xlu2 %2045  ;;  %v2277_v26 = vsel %vm2276_vm8, %v2275_v34, %v2038_v32  ;;  %vm2308_vm8 = vcmask 375808  }
 0x440   : > { %2193 = vrot.lane.b32.xlu0 %v4262_v50, %s2981_s7  ;;  %s2999_s7 = smov 126  }
 0x442   : > { %2189 = vrot.lane.b32.xlu2 %v4267_v7, %s2982_s29  ;;  %s3000_s29 = smov 124  }
 0x443   : > { %2185 = vrot.lane.b32.xlu1 %v4292_v8, %s2983_s5  ;;  %s2535_s5 = sshll.u32 %s3155_s1, 4 }
 0x444   : > { %v2058_v35 = vpop.permute.xlu2 %2057 }
 0x448   : > { %2205 = vrot.lane.b32.xlu0 %v4495_v55, %s2984_s11  ;;  %s229_s11 = scalar_lea.vmem [#allocation7], %s3158_s26  ;;  %s2541_s26 = sshll.u32 %s3042_s16, 4 }
 0x449   : > { %s2393_s16 = scalar_lea.sflag [#allocation4], %s3155_s1 }
 0x44a   : > { %2201 = vrot.lane.b32.xlu2 %v4506_v58, %s2985_s19  ;;  %s4556_s19 = scalar_lea.vmem [#allocation8], %s2535_s5 }
 0x44b   : > { %2197 = vrot.lane.b32.xlu1 %v4241_v39, %s2986_s20 }
 0x44c   : > { %v2070_v47 = vpop.permute.xlu2 %2069 }
 0x450   : > { %2217 = vrot.lane.b32.xlu0 %v4498_v30, %s2987_s27 }
 0x452   : > { %2213 = vrot.lane.b32.xlu2 %v4486_v61, %s2988_s6  ;;  %v2050_v7 = vpop.permute.xlu0 %2049  ;;  %s2404_s6 = scalar_lea.hbm %s4598_s3, %s2541_s26 }
 0x453   : > { %2209 = vrot.lane.b32.xlu1 %v4501_v13, %s2989_s21  ;;  %s2406_s21 = sshll.u32 %s4556_s19, 4  ;;  %s2407_s21 = int_to_ptr.vmem [resolvable:$true] %s2406_s21 }
 0x454   : > { %v2082_v50 = vpop.permute.xlu2 %2081 }
 0x455   : > { %v2042_v27 = vpop.permute.xlu1 %2041 }
 0x456   : > { %v2279_v49 = vsel %vm2278_vm9, %v2277_v26, %v2042_v27  ;;  %vm2310_vm9 = vcmask 392192  }
 0x457   : > { %v2281_v8 = vsel %vm2280_vm10, %v2279_v49, %v2046_v41  ;;  %vm2312_vm10 = vcmask 408576  }
 0x458   : > { %v2283_v59 = vsel %vm2282_vm11, %v2281_v8, %v2050_v7  ;;  %2229 = vrot.lane.b32.xlu0 %v4481_v53, %s2990_s28  ;;  %vm2314_vm11 = vcmask 424960   ;;  %s2408_s28 = sshll.u32 %s2404_s6, 4  ;;  %s2409_s28 = int_to_ptr.hbm [resolvable:$true] %s2408_s28 }
 0x45a   : > { %2225 = vrot.lane.b32.xlu2 %v4489_v14, %s2991_s9  ;;  %v2062_v19 = vpop.permute.xlu0 %2061  ;;  %s2878_s9 = sshra.s32 %s2409_s28, 4  ;;  %s2879_s9 = int_to_ptr.hbm [resolvable:$true] %s2878_s9 }
 0x45b   : > { %2221 = vrot.lane.b32.xlu1 %v4492_v29, %s2992_s22  ;;  %s2880_s22 = scalar_lea.hbm %s2879_s9, 16  ;;  %p2885_p3 = scmp.lt.s32.totalorder %s2879_s9, %s4598_s3 }
 0x45c   : > { %v2094_v39 = vpop.permute.xlu2 %2093  ;;  %p2881_p6 = scmp.ne.s32.totalorder %s2879_s9, %s2880_s22 }
 0x45d   : > { %v2054_v21 = vpop.permute.xlu1 %2053 }
 0x45e   : > { %v2285_v3 = vsel %vm2284_vm12, %v2283_v59, %v2054_v21  ;;  %vm2316_vm12 = vcmask 441344   ;;  %p2882_p13 = pnand %p2881_p6, %p3067_p11 }
 0x45f   : > { %v2287_v10 = vsel %vm2286_vm13, %v2285_v3, %v2058_v35  ;;  %vm2318_vm13 = vcmask 457728  }
 0x460   : > { %v2289_v60 = vsel %vm2288_vm14, %v2287_v10, %v2062_v19  ;;  %2241 = vrot.lane.b32.xlu0 %v4382_v51, %s2993_s10  ;;  %vm2320_vm14 = vcmask 474112   ;;  %p2883_p2 = pneg %p2882_p13 }
 0x462   : > { %2237 = vrot.lane.b32.xlu2 %v4385_v16, %s2994_s25  ;;  %v2074_v53 = vpop.permute.xlu0 %2073 }
 0x463   : > { %2233 = vrot.lane.b32.xlu1 %v4397_v6, %s2995_s17  ;;  %s2884_s17 = scalar_lea.hbm %s4598_s3, 32 }
 0x464   : > { %v2106_v22 = vpop.permute.xlu2 %2105  ;;  %p2886_p4 = scmp.lt.s32.totalorder %s2884_s17, %s2880_s22 }
 0x465   : > { %v2066_v56 = vpop.permute.xlu1 %2065 }
 0x466   : > { %v2291_v15 = vsel %vm2290_vm15, %v2289_v60, %v2066_v56  ;;  %vm2322_vm15 = vcmask 490496   ;;  %p2887_p5 = por %p2886_p4, %p2885_p3 }
 0x467   : > { %v2293_v1 = vsel %vm2292_vm0, %v2291_v15, %v2070_v47  ;;  %vm2324_vm0 = vcmask 506880  }
 0x468   : > { %v2295_v11 = vsel %vm2294_vm1, %v2293_v1, %v2074_v53  ;;  %2253 = vrot.lane.b32.xlu0 %v4371_v52, %s2996_s8  ;;  %p2888_p7 = pnand %p2887_p5, %p2883_p2 }
 0x46a   : > { %2249 = vrot.lane.b32.xlu2 %v4391_v17, %s2997_s4  ;;  %v2086_v51 = vpop.permute.xlu0 %2085 }
 0x46b   : > { %2245 = vrot.lane.b32.xlu1 %v4376_v63, %s2998_s30 }
 0x46c   : > { %v2118_v6 = vpop.permute.xlu2 %2117 }
 0x46d   : > { %v2078_v16 = vpop.permute.xlu1 %2077 }
 0x46e   : > { %v2297_v42 = vsel %vm2296_vm2, %v2295_v11, %v2078_v16  ;;  %vm2326_vm2 = vcmask 523264  }
 0x46f   : > { %v2299_v61 = vsel %vm2298_vm3, %v2297_v42, %v2082_v50  ;;  %vm2328_vm3 = vcmask 539648  }
 0x470   : > { %v2301_v37 = vsel %vm2300_vm4, %v2299_v61, %v2086_v51  ;;  %vm2330_vm4 = vcmask 556032  }
 0x472   : > { %2261 = vrot.lane.b32.xlu2 %v4361_v20, %s2999_s7  ;;  %v2098_v52 = vpop.permute.xlu0 %2097 }
 0x473   : > { %2257 = vrot.lane.b32.xlu1 %v4401_v46, %s3000_s29 }
 0x474   : > { %v2130_v29 = vpop.permute.xlu2 %2129 }
 0x475   : > { %v2090_v17 = vpop.permute.xlu1 %2089 }
 0x476   : > { %v2303_v63 = vsel %vm2302_vm5, %v2301_v37, %v2090_v17  ;;  %vm2332_vm5 = vcmask 572416  }
 0x477   : > { %v2305_v14 = vsel %vm2304_vm6, %v2303_v63, %v2094_v39  ;;  %vm2334_vm6 = vcmask 588800  }
 0x478   : > { %v2307_v55 = vsel %vm2306_vm7, %v2305_v14, %v2098_v52  ;;  %vm2336_vm7 = vcmask 605184  }
 0x47a   : > { %v2110_v9 = vpop.permute.xlu0 %2109 }
 0x47c   : > { %v2142_v54 = vpop.permute.xlu2 %2141 }
 0x47d   : > { %v2102_v30 = vpop.permute.xlu1 %2101 }
 0x47e   : > { %v2309_v13 = vsel %vm2308_vm8, %v2307_v55, %v2102_v30  ;;  %vm2338_vm8 = vcmask 621568  }
 0x47f   : > { %v2311_v58 = vsel %vm2310_vm9, %v2309_v13, %v2106_v22  ;;  %vm2340_vm9 = vcmask 637952  }
 0x480   : > { %v2313_v2 = vsel %vm2312_vm10, %v2311_v58, %v2110_v9  ;;  %vm2342_vm10 = vcmask 654336  }
 0x482   : > { %v2122_v20 = vpop.permute.xlu0 %2121 }
 0x484   : > { %v2154_v46 = vpop.permute.xlu2 %2153 }
 0x485   : > { %v2114_v44 = vpop.permute.xlu1 %2113 }
 0x486   : > { %v2315_v62 = vsel %vm2314_vm11, %v2313_v2, %v2114_v44  ;;  %vm2344_vm11 = vcmask 670720  }
 0x487   : > { %v2317_v40 = vsel %vm2316_vm12, %v2315_v62, %v2118_v6  ;;  %vm2346_vm12 = vcmask 687104   ;;  %v265_v6 = vld [vmem:[%s229_s11] sm:$0xff] }
 0x488   : > { %v2319_v0 = vsel %vm2318_vm13, %v2317_v40, %v2122_v20  ;;  %vm2348_vm13 = vcmask 703488   ;;  %2391 = vst.msk [vmem:[%s4556_s19 + $0x8] sm:$0xff] %vm2294_vm1, %v265_v6  ;;  %vm2378_vm1 = vcmask 949248  }
 0x48a   : > { %v2134_v33 = vpop.permute.xlu0 %2133 }
 0x48c   : > { %v2166_v36 = vpop.permute.xlu2 %2165 }
 0x48d   : > { %v2126_v23 = vpop.permute.xlu1 %2125 }
 0x48e   : > { %v2321_v45 = vsel %vm2320_vm14, %v2319_v0, %v2126_v23  ;;  %vm2350_vm14 = vcmask 719872  }
 0x48f   : > { %v2323_v24 = vsel %vm2322_vm15, %v2321_v45, %v2130_v29  ;;  %vm2352_vm15 = vcmask 736256  }
 0x490   : > { %v2325_v57 = vsel %vm2324_vm0, %v2323_v24, %v2134_v33  ;;  %vm2354_vm0 = vcmask 752640  }
 0x492   : > { %v2146_v28 = vpop.permute.xlu0 %2145 }
 0x494   : > { %v2178_v5 = vpop.permute.xlu2 %2177 }
 0x495   : > { %v2138_v48 = vpop.permute.xlu1 %2137 }
 0x496   : > { %v2327_v31 = vsel %vm2326_vm2, %v2325_v57, %v2138_v48  ;;  %vm2356_vm2 = vcmask 769024  }
 0x497   : > { %v2329_v18 = vsel %vm2328_vm3, %v2327_v31, %v2142_v54  ;;  %vm2358_vm3 = vcmask 785408  }
 0x498   : > { %v2331_v38 = vsel %vm2330_vm4, %v2329_v18, %v2146_v28  ;;  %vm2360_vm4 = vcmask 801792  }
 0x49a   : > { %v2158_v43 = vpop.permute.xlu0 %2157 }
 0x49c   : > { %v2190_v41 = vpop.permute.xlu2 %2189 }
 0x49d   : > { %v2150_v25 = vpop.permute.xlu1 %2149 }
 0x49e   : > { %v2333_v34 = vsel %vm2332_vm5, %v2331_v38, %v2150_v25  ;;  %vm2362_vm5 = vcmask 818176  }
 0x49f   : > { %v2335_v32 = vsel %vm2334_vm6, %v2333_v34, %v2154_v46  ;;  %vm2364_vm6 = vcmask 834560  }
 0x4a0   : > { %v2337_v35 = vsel %vm2336_vm7, %v2335_v32, %v2158_v43  ;;  %vm2366_vm7 = vcmask 850944  }
 0x4a2   : > { %v2170_v4 = vpop.permute.xlu0 %2169 }
 0x4a4   : > { %v2202_v49 = vpop.permute.xlu2 %2201 }
 0x4a5   : > { %v2162_v12 = vpop.permute.xlu1 %2161 }
 0x4a6   : > { %v2339_v50 = vsel %vm2338_vm8, %v2337_v35, %v2162_v12  ;;  %vm2368_vm8 = vcmask 867328  }
 0x4a7   : > { %v2341_v7 = vsel %vm2340_vm9, %v2339_v50, %v2166_v36  ;;  %vm2370_vm9 = vcmask 883712  }
 0x4a8   : > { %v2343_v8 = vsel %vm2342_vm10, %v2341_v7, %v2170_v4  ;;  %vm2372_vm10 = vcmask 900096  }
 0x4aa   : > { %v2182_v26 = vpop.permute.xlu0 %2181 }
 0x4ac   : > { %v2214_v53 = vpop.permute.xlu2 %2213 }
 0x4ad   : > { %v2174_v47 = vpop.permute.xlu1 %2173 }
 0x4ae   : > { %v2345_v59 = vsel %vm2344_vm11, %v2343_v8, %v2174_v47  ;;  %vm2374_vm11 = vcmask 916480  }
 0x4af   : > { %v2347_v19 = vsel %vm2346_vm12, %v2345_v59, %v2178_v5  ;;  %vm2376_vm12 = vcmask 932864  }
 0x4b0   : > { %v2349_v21 = vsel %vm2348_vm13, %v2347_v19, %v2182_v26  ;;  %vm2380_vm13 = vcmask 965632  }
 0x4b2   : > { %v2194_v27 = vpop.permute.xlu0 %2193 }
 0x4b4   : > { %v2226_v16 = vpop.permute.xlu2 %2225 }
 0x4b5   : > { %v2186_v39 = vpop.permute.xlu1 %2185 }
 0x4b6   : > { %v2351_v3 = vsel %vm2350_vm14, %v2349_v21, %v2186_v39  ;;  %vm2382_vm14 = vcmask 982016  }
 0x4b7   : > { %v2353_v22 = vsel %vm2352_vm15, %v2351_v3, %v2190_v41  ;;  %vm2384_vm15 = vcmask 998400  }
 0x4b8   : > { %v2355_v56 = vsel %vm2354_vm0, %v2353_v22, %v2194_v27  ;;  %vm2386_vm0 = vcmask 1014784  }
 0x4ba   : > { %v2206_v10 = vpop.permute.xlu0 %2205 }
 0x4bc   : > { %v2238_v29 = vpop.permute.xlu2 %2237 }
 0x4bd   : > { %v2198_v60 = vpop.permute.xlu1 %2197 }
 0x4be   : > { %v2357_v15 = vsel %vm2356_vm2, %v2355_v56, %v2198_v60  ;;  %vm2388_vm2 = vcmask 1031168  }
 0x4bf   : > { %v2359_v11 = vsel %vm2358_vm3, %v2357_v15, %v2202_v49 }
 0x4c0   : > { %v2361_v42 = vsel %vm2360_vm4, %v2359_v11, %v2206_v10 }
 0x4c2   : > { %v2218_v51 = vpop.permute.xlu0 %2217 }
 0x4c4   : > { %v2250_v20 = vpop.permute.xlu2 %2249 }
 0x4c5   : > { %v2210_v1 = vpop.permute.xlu1 %2209 }
 0x4c6   : > { %v2363_v61 = vsel %vm2362_vm5, %v2361_v42, %v2210_v1 }
 0x4c7   : > { %v2365_v37 = vsel %vm2364_vm6, %v2363_v61, %v2214_v53 }
 0x4c8   : > { %v2367_v63 = vsel %vm2366_vm7, %v2365_v37, %v2218_v51 }
 0x4ca   : > { %v2230_v17 = vpop.permute.xlu0 %2229 }
 0x4cc   : > { %v2262_v40 = vpop.permute.xlu2 %2261 }
 0x4cd   : > { %v2222_v52 = vpop.permute.xlu1 %2221 }
 0x4ce   : > { %v2369_v14 = vsel %vm2368_vm8, %v2367_v63, %v2222_v52 }
 0x4cf   : > { %v2371_v55 = vsel %vm2370_vm9, %v2369_v14, %v2226_v16 }
 0x4d0   : > { %v2373_v30 = vsel %vm2372_vm10, %v2371_v55, %v2230_v17 }
 0x4d2   : > { %v2242_v58 = vpop.permute.xlu0 %2241 }
 0x4d5   : > { %v2234_v9 = vpop.permute.xlu1 %2233 }
 0x4d6   : > { %v2375_v13 = vsel %vm2374_vm11, %v2373_v30, %v2234_v9 }
 0x4d7   : > { %v2377_v54 = vsel %vm2376_vm12, %v2375_v13, %v2238_v29 }
 0x4d8   : > { %v2379_v33 = vsel %vm2378_vm1, %v2377_v54, %v2242_v58 }
 0x4da   : > { %v2254_v2 = vpop.permute.xlu0 %2253 }
 0x4dd   : > { %v2246_v44 = vpop.permute.xlu1 %2245 }
 0x4de   : > { %v2381_v46 = vsel %vm2380_vm13, %v2379_v33, %v2246_v44 }
 0x4df   : > { %v2383_v23 = vsel %vm2382_vm14, %v2381_v46, %v2250_v20 }
 0x4e0   : > { %v2385_v28 = vsel %vm2384_vm15, %v2383_v23, %v2254_v2 }
 0x4e5   : > { %v2258_v62 = vpop.permute.xlu1 %2257 }
 0x4e6   : > { %v2387_v48 = vsel %vm2386_vm0, %v2385_v28, %v2258_v62 }
 0x4e7   : > { %v2389_v36 = vsel %vm2388_vm2, %v2387_v48, %v2262_v40 }
 0x4e8   : > { %2390 = vst [vmem:[%s4556_s19] sm:$0xff] %v2389_v36 }
 0x4e9   : > { %2891 = shalt.err (!%p2888_p7)
}
 0x4ea   : > { %2548 = dma.vmem_to_hbm [thread:$0]  (%p3067_p11), %s2407_s21, 256, %s2409_s28, %s2393_s16  }
 0x4eb PF: > { %s2420_s1 = sand.u32 1, %s2922_s12   ;;  %p2561_p0 = pnand %p2524_p9, %p3071_p12 }
 0x4ec   : > { %s2421_s30 = scalar_lea.sflag [#allocation4], %s2420_s1 }
 0x4ed   : > { %p2562_p8 = pneg %p2561_p0 }
 0x4ef   : > { %2917 = dma.done.wait (%p2562_p8), %s2421_s30, 256  }
 0x4f0   : > { %2919 = vsyncadd (%p2562_p8), %s2421_s30, 4294967040  ;;  %s4725_s7 = sld [smem:[#allocation12_spill]]  ;;  %p19_p10 = scmp.ge.s32.totalorder %s3046_s18, 4  }
 0x4f1   : > { %s4726_s12 = smov %s2926_s13  ;;  %s4727_s13 = smov %s2930_s14 }
 0x4f2   : > { %s4729_s15 = smov %s3046_s18  ;;  %21 = sbr.rel (!%p19_p10) target bundleno = 9 (0x9), region = 101 }
 0x4f6   : > { %s4728_s14 = smov %s4725_s7 }
 0x4f7   :  { %2427 = vsyncpa [#allocation3], 1 }
 0x4f8   :  { %2429 = vsyncpa [#allocation3 + $0x1], 1 }
 0x4f9   :  { %2430 = vsyncpa [#allocation6], 1 }
 0x4fa   :  { %2432 = vsyncpa [#allocation6 + $0x1], 1 }
 0x4fb   :  { %2433 = vsyncpa [#allocation4], 1 }
 0x4fc   :  { %2435 = vsyncpa [#allocation4 + $0x1], 1 }

</bundles_post_ra>
